<compile_context>
chip_gen: v7x
topology: tpu7x:2x2x1
jax: 0.10.0
libtpu: 0.0.40
codegen_flags: <defaults>
</compile_context>

<pallas_src>
import functools

import jax
import jax.numpy as jnp
from jax.experimental import pallas as pl
from jax.experimental.pallas import tpu as pltpu

EPS = 1e-5


def _layernorm(x, gamma, beta):
    # Fused moments: one traversal computing E[x] and E[x^2].
    mu = jnp.mean(x, axis=-1, keepdims=True)
    ex2 = jnp.mean(x * x, axis=-1, keepdims=True)
    var = jnp.maximum(ex2 - mu * mu, 0.0)
    return (x - mu) * jax.lax.rsqrt(var + EPS) * gamma + beta


def transformer_block_kernel(q4_ref, k4_ref, v4_ref, qres_ref,
                             wq_ref, wk_ref, wv_ref,      # (hd, hd) bf16, right-mul
                             wo_ref, bo_ref,              # (B, hd, E) bf16, (1, E)
                             g1_ref, be1_ref,             # (1, E) layernorm1
                             w1_ref, b1_ref,              # (E, F) bf16, (1, F)
                             w2_ref, b2_ref,              # (F, E) bf16, (1, E)
                             g2_ref, be2_ref,             # (1, E) layernorm2
                             o_ref,
                             *, heads, head_dim, n_batch):
    B, S, hd = q4_ref.shape                 # B == heads * n_batch (heads-major)
    E = heads * head_dim
    bf16, f32 = jnp.bfloat16, jnp.float32

    def project(x_ref, w_ref):
        # shared per-head weight: (B*S, hd) @ (hd, hd), bf16 in / f32 accumulate
        x2 = x_ref[...].reshape(B * S, hd).astype(bf16)
        y = jnp.dot(x2, w_ref[...], preferred_element_type=f32)
        return y.reshape(B, S, hd)

    qp = project(q4_ref, wq_ref)
    kp = project(k4_ref, wk_ref)
    vp = project(v4_ref, wv_ref)

    # torch: energy / (head_dim ** 1 / 2)  ==  energy * (2 / head_dim)
    scale = 2.0 / float(head_dim)

    energy = jnp.einsum('bqd,bkd->bqk', qp.astype(bf16), kp.astype(bf16),
                        preferred_element_type=f32) * scale
    energy = energy - jnp.max(energy, axis=-1, keepdims=True)
    p = jnp.exp(energy)
    p = p * pl.reciprocal(jnp.sum(p, axis=-1, keepdims=True), approx=True)

    out = jnp.einsum('bqk,bkd->bqd', p.astype(bf16), vp.astype(bf16),
                     preferred_element_type=f32)               # (B, S, hd)

    # fc_out fold: each (head, batch) partial against that head's slice of Wo.T,
    # reduced over the heads axis  (concat_h(out_h) @ Wo.T == sum_h out_h @ Wo.T[h]).
    att_b = jnp.einsum('bsd,bde->bse', out.astype(bf16), wo_ref[...],
                       preferred_element_type=f32)             # (B, S, E)
    att = jnp.sum(att_b.reshape(heads, n_batch, S, E), axis=0) + bo_ref[...]

    # Residual + LayerNorm 1 (dropout = identity).
    x = _layernorm(att + qres_ref[...], g1_ref[...], be1_ref[...])    # (N, S, E)

    # Feed-forward: Linear -> ReLU -> Linear, bf16 in / f32 accumulate.
    x2 = x.reshape(n_batch * S, E)
    h1 = jnp.dot(x2.astype(bf16), w1_ref[...], preferred_element_type=f32) + b1_ref[...]
    h1 = jnp.maximum(h1, 0.0)
    ff = jnp.dot(h1.astype(bf16), w2_ref[...], preferred_element_type=f32) + b2_ref[...]
    ff = ff.reshape(n_batch, S, E)

    # Residual + LayerNorm 2 (dropout = identity).
    o_ref[...] = _layernorm(ff + x, g2_ref[...], be2_ref[...])


def transformer_block(values, keys, queries, params, *, heads):
    N, S, E = queries.shape
    hd = E // heads
    F = params["w1"].shape[0]
    B = heads * N
    bf16 = jnp.bfloat16

    def split_heads(x):  # (N, S, E) -> (heads*N, S, hd), heads-major batch index
        return (x.reshape(N, S, heads, hd)
                 .transpose(2, 0, 1, 3)
                 .reshape(B, S, hd))

    q4 = split_heads(queries)
    k4 = split_heads(keys)
    v4 = split_heads(values)

    # Shared per-head projection weights (right-multiplication form, bf16).
    wq_t = params["wq"].T.astype(bf16)
    wk_t = params["wk"].T.astype(bf16)
    wv_t = params["wv"].T.astype(bf16)
    # fc_out weight split per head and replicated over batch so the fold is one
    # batched dot_general: wo_rep[h*N + n] = Wo.T[h*hd:(h+1)*hd, :]
    wo_rep = (jnp.broadcast_to(params["wo"].T.reshape(heads, 1, hd, E),
                               (heads, N, hd, E))
              .reshape(B, hd, E).astype(bf16))
    bo = params["bo"].reshape(1, E)
    g1 = params["g1"].reshape(1, E)
    be1 = params["be1"].reshape(1, E)
    w1_t = params["w1"].T.astype(bf16)
    b1 = params["b1"].reshape(1, F)
    w2_t = params["w2"].T.astype(bf16)
    b2 = params["b2"].reshape(1, E)
    g2 = params["g2"].reshape(1, E)
    be2 = params["be2"].reshape(1, E)

    kernel = functools.partial(transformer_block_kernel,
                               heads=heads, head_dim=hd, n_batch=N)

    vmem_spec = pl.BlockSpec(memory_space=pltpu.MemorySpace.VMEM)
    args = (q4, k4, v4, queries, wq_t, wk_t, wv_t, wo_rep, bo,
            g1, be1, w1_t, b1, w2_t, b2, g2, be2)

    # Tiny problem -> single invocation (grid collapsed), everything in VMEM.
    return pl.pallas_call(
        kernel,
        out_shape=jax.ShapeDtypeStruct((N, S, E), queries.dtype),
        in_specs=[vmem_spec] * len(args),
        out_specs=vmem_spec,
    )(*args)


def reference(values, keys, queries, params, *, heads):
    """Pure-JAX re-implementation of the PyTorch forward (for validation)."""
    N, S, E = queries.shape
    hd = E // heads

    def ln(x, g, b):
        mu = jnp.mean(x, axis=-1, keepdims=True)
        var = jnp.mean((x - mu) ** 2, axis=-1, keepdims=True)
        return (x - mu) / jnp.sqrt(var + EPS) * g + b

    v4 = jnp.einsum('nshd,od->nsho', values.reshape(N, S, heads, hd), params["wv"])
    k4 = jnp.einsum('nshd,od->nsho', keys.reshape(N, S, heads, hd), params["wk"])
    q4 = jnp.einsum('nshd,od->nsho', queries.reshape(N, S, heads, hd), params["wq"])
    energy = jnp.einsum('nqhd,nkhd->nhqk', q4, k4)
    attn = jax.nn.softmax(energy / (hd / 2.0), axis=3)
    out = jnp.einsum('nhql,nlhd->nqhd', attn, v4).reshape(N, S, E)
    out = out @ params["wo"].T + params["bo"]
    x = ln(out + queries, params["g1"], params["be1"])
    h1 = jnp.maximum(x @ params["w1"].T + params["b1"], 0.0)
    ff = h1 @ params["w2"].T + params["b2"]
    return ln(ff + x, params["g2"], params["be2"])


if __name__ == "__main__":
    N, S, E, heads, fexp = 2, 8, 32, 4, 4
    hd = E // heads
    F = fexp * E

    key = jax.random.PRNGKey(0)
    ks = jax.random.split(key, 16)
    params = {
        "wv": jax.random.normal(ks[0], (hd, hd), jnp.float32) * 0.1,
        "wk": jax.random.normal(ks[1], (hd, hd), jnp.float32) * 0.1,
        "wq": jax.random.normal(ks[2], (hd, hd), jnp.float32) * 0.1,
        "wo": jax.random.normal(ks[3], (E, E), jnp.float32) * 0.1,
        "bo": jax.random.normal(ks[4], (E,), jnp.float32) * 0.1,
        "g1": jnp.ones((E,), jnp.float32) + 0.05 * jax.random.normal(ks[5], (E,)),
        "be1": jax.random.normal(ks[6], (E,), jnp.float32) * 0.05,
        "w1": jax.random.normal(ks[7], (F, E), jnp.float32) * 0.1,
        "b1": jax.random.normal(ks[8], (F,), jnp.float32) * 0.1,
        "w2": jax.random.normal(ks[9], (E, F), jnp.float32) * 0.1,
        "b2": jax.random.normal(ks[10], (E,), jnp.float32) * 0.1,
        "g2": jnp.ones((E,), jnp.float32) + 0.05 * jax.random.normal(ks[11], (E,)),
        "be2": jax.random.normal(ks[12], (E,), jnp.float32) * 0.05,
    }

    values = jax.random.normal(ks[13], (N, S, E), jnp.float32)
    keys_in = jax.random.normal(ks[14], (N, S, E), jnp.float32)
    queries = jax.random.normal(ks[15], (N, S, E), jnp.float32)

    out = transformer_block(values, keys_in, queries, params, heads=heads)
    out = jax.block_until_ready(out)

    ref = reference(values, keys_in, queries, params, heads=heads)
    assert out.shape == (N, S, E)
    assert bool(jnp.all(jnp.isfinite(out))), "non-finite output"
    # bf16 matmul operands (f32 accumulation) loosen agreement vs the pure-f32
    # reference; tolerance chosen accordingly.
    assert jnp.allclose(out, ref, atol=3e-2, rtol=3e-2), "mismatch vs JAX reference"

    print("KERNEL_OK")
</pallas_src>

<mosaic_0001>
module attributes {stable_mosaic.version = 11 : i64} {
  func.func @transformer_block_kernel(%arg0: memref<8x8x8xf32, #tpu.memory_space<vmem>>, %arg1: memref<8x8x8xf32, #tpu.memory_space<vmem>>, %arg2: memref<8x8x8xf32, #tpu.memory_space<vmem>>, %arg3: memref<2x8x32xf32, #tpu.memory_space<vmem>>, %arg4: memref<8x8xbf16, #tpu.memory_space<vmem>>, %arg5: memref<8x8xbf16, #tpu.memory_space<vmem>>, %arg6: memref<8x8xbf16, #tpu.memory_space<vmem>>, %arg7: memref<8x8x32xbf16, #tpu.memory_space<vmem>>, %arg8: memref<1x32xf32, #tpu.memory_space<vmem>>, %arg9: memref<1x32xf32, #tpu.memory_space<vmem>>, %arg10: memref<1x32xf32, #tpu.memory_space<vmem>>, %arg11: memref<32x128xbf16, #tpu.memory_space<vmem>>, %arg12: memref<1x128xf32, #tpu.memory_space<vmem>>, %arg13: memref<128x32xbf16, #tpu.memory_space<vmem>>, %arg14: memref<1x32xf32, #tpu.memory_space<vmem>>, %arg15: memref<1x32xf32, #tpu.memory_space<vmem>>, %arg16: memref<1x32xf32, #tpu.memory_space<vmem>>, %arg17: memref<2x8x32xf32, #tpu.memory_space<vmem>>) attributes {dimension_semantics = [], scalar_prefetch = 0 : i64, scratch_operands = 0 : i64, tpu.core_type = #tpu.core_type<tc>} {
    %c0 = arith.constant 0 : index
    %c0_0 = arith.constant 0 : index
    %c0_1 = arith.constant 0 : index
    %0 = vector.load %arg0[%c0, %c0_0, %c0_1] : memref<8x8x8xf32, #tpu.memory_space<vmem>>, vector<8x8x8xf32>
    %1 = vector.shape_cast %0 : vector<8x8x8xf32> to vector<64x8xf32>
    %2 = arith.truncf %1 : vector<64x8xf32> to vector<64x8xbf16>
    %c0_2 = arith.constant 0 : index
    %c0_3 = arith.constant 0 : index
    %3 = vector.load %arg4[%c0_2, %c0_3] : memref<8x8xbf16, #tpu.memory_space<vmem>>, vector<8x8xbf16>
    %cst = arith.constant dense<0.000000e+00> : vector<64x8xf32>
    %4 = tpu.matmul %2, %3, %cst {dimension_numbers = #tpu.dot_dimension_numbers<[1], [0], [0], [1], [0, 0, 1, 1], [], []>} : vector<64x8xbf16>, vector<8x8xbf16>, vector<64x8xf32> -> vector<64x8xf32>
    %5 = vector.shape_cast %4 : vector<64x8xf32> to vector<8x8x8xf32>
    %c0_4 = arith.constant 0 : index
    %c0_5 = arith.constant 0 : index
    %c0_6 = arith.constant 0 : index
    %6 = vector.load %arg1[%c0_4, %c0_5, %c0_6] : memref<8x8x8xf32, #tpu.memory_space<vmem>>, vector<8x8x8xf32>
    %7 = vector.shape_cast %6 : vector<8x8x8xf32> to vector<64x8xf32>
    %8 = arith.truncf %7 : vector<64x8xf32> to vector<64x8xbf16>
    %c0_7 = arith.constant 0 : index
    %c0_8 = arith.constant 0 : index
    %9 = vector.load %arg5[%c0_7, %c0_8] : memref<8x8xbf16, #tpu.memory_space<vmem>>, vector<8x8xbf16>
    %cst_9 = arith.constant dense<0.000000e+00> : vector<64x8xf32>
    %10 = tpu.matmul %8, %9, %cst_9 {dimension_numbers = #tpu.dot_dimension_numbers<[1], [0], [0], [1], [0, 0, 1, 1], [], []>} : vector<64x8xbf16>, vector<8x8xbf16>, vector<64x8xf32> -> vector<64x8xf32>
    %11 = vector.shape_cast %10 : vector<64x8xf32> to vector<8x8x8xf32>
    %c0_10 = arith.constant 0 : index
    %c0_11 = arith.constant 0 : index
    %c0_12 = arith.constant 0 : index
    %12 = vector.load %arg2[%c0_10, %c0_11, %c0_12] : memref<8x8x8xf32, #tpu.memory_space<vmem>>, vector<8x8x8xf32>
    %13 = vector.shape_cast %12 : vector<8x8x8xf32> to vector<64x8xf32>
    %14 = arith.truncf %13 : vector<64x8xf32> to vector<64x8xbf16>
    %c0_13 = arith.constant 0 : index
    %c0_14 = arith.constant 0 : index
    %15 = vector.load %arg6[%c0_13, %c0_14] : memref<8x8xbf16, #tpu.memory_space<vmem>>, vector<8x8xbf16>
    %cst_15 = arith.constant dense<0.000000e+00> : vector<64x8xf32>
    %16 = tpu.matmul %14, %15, %cst_15 {dimension_numbers = #tpu.dot_dimension_numbers<[1], [0], [0], [1], [0, 0, 1, 1], [], []>} : vector<64x8xbf16>, vector<8x8xbf16>, vector<64x8xf32> -> vector<64x8xf32>
    %17 = vector.shape_cast %16 : vector<64x8xf32> to vector<8x8x8xf32>
    %18 = arith.truncf %5 : vector<8x8x8xf32> to vector<8x8x8xbf16>
    %19 = arith.truncf %11 : vector<8x8x8xf32> to vector<8x8x8xbf16>
    "tpu.trace_start"() <{level = 10 : i32, message = "bqd,bkd->bqk"}> : () -> ()
    %cst_16 = arith.constant dense<0.000000e+00> : vector<8x8x8xf32>
    %20 = tpu.matmul %18, %19, %cst_16 {dimension_numbers = #tpu.dot_dimension_numbers<[2], [2], [1], [1], [0, 0, 0, 1, 1, 1], [0], [0]>} : vector<8x8x8xbf16>, vector<8x8x8xbf16>, vector<8x8x8xf32> -> vector<8x8x8xf32>
    "tpu.trace_stop"() : () -> ()
    %cst_17 = arith.constant 2.500000e-01 : f32
    %21 = vector.broadcast %cst_17 : f32 to vector<8x8x8xf32>
    %22 = arith.mulf %20, %21 : vector<8x8x8xf32>
    %cst_18 = arith.constant dense<0xFF800000> : vector<8x8xf32>
    %23 = vector.multi_reduction <maximumf>, %22, %cst_18 [2] : vector<8x8x8xf32> to vector<8x8xf32>
    %24 = vector.shape_cast %23 : vector<8x8xf32> to vector<8x8x1xf32>
    %25 = vector.broadcast %24 : vector<8x8x1xf32> to vector<8x8x8xf32>
    %26 = arith.subf %22, %25 : vector<8x8x8xf32>
    %27 = math.exp %26 : vector<8x8x8xf32>
    %cst_19 = arith.constant dense<0.000000e+00> : vector<8x8xf32>
    %28 = vector.multi_reduction <add>, %27, %cst_19 [2] : vector<8x8x8xf32> to vector<8x8xf32>
    %29 = vector.shape_cast %28 : vector<8x8xf32> to vector<8x8x1xf32>
    %30 = tpu.reciprocal %29 {approx = true} : vector<8x8x1xf32> -> vector<8x8x1xf32>
    %31 = vector.broadcast %30 : vector<8x8x1xf32> to vector<8x8x8xf32>
    %32 = arith.mulf %27, %31 : vector<8x8x8xf32>
    %33 = arith.truncf %32 : vector<8x8x8xf32> to vector<8x8x8xbf16>
    %34 = arith.truncf %17 : vector<8x8x8xf32> to vector<8x8x8xbf16>
    "tpu.trace_start"() <{level = 10 : i32, message = "bqk,bkd->bqd"}> : () -> ()
    %cst_20 = arith.constant dense<0.000000e+00> : vector<8x8x8xf32>
    %35 = tpu.matmul %33, %34, %cst_20 {dimension_numbers = #tpu.dot_dimension_numbers<[2], [1], [1], [2], [0, 0, 0, 1, 1, 2], [0], [0]>} : vector<8x8x8xbf16>, vector<8x8x8xbf16>, vector<8x8x8xf32> -> vector<8x8x8xf32>
    "tpu.trace_stop"() : () -> ()
    %36 = arith.truncf %35 : vector<8x8x8xf32> to vector<8x8x8xbf16>
    %c0_21 = arith.constant 0 : index
    %c0_22 = arith.constant 0 : index
    %c0_23 = arith.constant 0 : index
    %37 = vector.load %arg7[%c0_21, %c0_22, %c0_23] : memref<8x8x32xbf16, #tpu.memory_space<vmem>>, vector<8x8x32xbf16>
    "tpu.trace_start"() <{level = 10 : i32, message = "bsd,bde->bse"}> : () -> ()
    %cst_24 = arith.constant dense<0.000000e+00> : vector<8x8x32xf32>
    %38 = tpu.matmul %36, %37, %cst_24 {dimension_numbers = #tpu.dot_dimension_numbers<[2], [1], [1], [2], [0, 0, 0, 1, 1, 2], [0], [0]>} : vector<8x8x8xbf16>, vector<8x8x32xbf16>, vector<8x8x32xf32> -> vector<8x8x32xf32>
    "tpu.trace_stop"() : () -> ()
    %39 = vector.shape_cast %38 : vector<8x8x32xf32> to vector<4x2x8x32xf32>
    %cst_25 = arith.constant dense<0.000000e+00> : vector<2x8x32xf32>
    %40 = vector.multi_reduction <add>, %39, %cst_25 [0] : vector<4x2x8x32xf32> to vector<2x8x32xf32>
    %c0_26 = arith.constant 0 : index
    %c0_27 = arith.constant 0 : index
    %41 = vector.load %arg8[%c0_26, %c0_27] : memref<1x32xf32, #tpu.memory_space<vmem>>, vector<1x32xf32>
    %42 = vector.shape_cast %41 : vector<1x32xf32> to vector<1x1x32xf32>
    %43 = vector.broadcast %42 : vector<1x1x32xf32> to vector<2x8x32xf32>
    %44 = arith.addf %40, %43 : vector<2x8x32xf32>
    %c0_28 = arith.constant 0 : index
    %c0_29 = arith.constant 0 : index
    %c0_30 = arith.constant 0 : index
    %45 = vector.load %arg3[%c0_28, %c0_29, %c0_30] : memref<2x8x32xf32, #tpu.memory_space<vmem>>, vector<2x8x32xf32>
    %46 = arith.addf %44, %45 : vector<2x8x32xf32>
    %c0_31 = arith.constant 0 : index
    %c0_32 = arith.constant 0 : index
    %47 = vector.load %arg9[%c0_31, %c0_32] : memref<1x32xf32, #tpu.memory_space<vmem>>, vector<1x32xf32>
    %c0_33 = arith.constant 0 : index
    %c0_34 = arith.constant 0 : index
    %48 = vector.load %arg10[%c0_33, %c0_34] : memref<1x32xf32, #tpu.memory_space<vmem>>, vector<1x32xf32>
    %cst_35 = arith.constant dense<0.000000e+00> : vector<2x8xf32>
    %49 = vector.multi_reduction <add>, %46, %cst_35 [2] : vector<2x8x32xf32> to vector<2x8xf32>
    %50 = vector.shape_cast %49 : vector<2x8xf32> to vector<2x8x1xf32>
    %cst_36 = arith.constant 3.200000e+01 : f32
    %51 = vector.broadcast %cst_36 : f32 to vector<2x8x1xf32>
    %52 = arith.divf %50, %51 : vector<2x8x1xf32>
    %53 = arith.mulf %46, %46 : vector<2x8x32xf32>
    %cst_37 = arith.constant dense<0.000000e+00> : vector<2x8xf32>
    %54 = vector.multi_reduction <add>, %53, %cst_37 [2] : vector<2x8x32xf32> to vector<2x8xf32>
    %55 = vector.shape_cast %54 : vector<2x8xf32> to vector<2x8x1xf32>
    %cst_38 = arith.constant 3.200000e+01 : f32
    %56 = vector.broadcast %cst_38 : f32 to vector<2x8x1xf32>
    %57 = arith.divf %55, %56 : vector<2x8x1xf32>
    %58 = arith.mulf %52, %52 : vector<2x8x1xf32>
    %59 = arith.subf %57, %58 : vector<2x8x1xf32>
    %cst_39 = arith.constant 0.000000e+00 : f32
    %60 = vector.broadcast %cst_39 : f32 to vector<2x8x1xf32>
    %61 = arith.maximumf %59, %60 : vector<2x8x1xf32>
    %62 = vector.broadcast %52 : vector<2x8x1xf32> to vector<2x8x32xf32>
    %63 = arith.subf %46, %62 : vector<2x8x32xf32>
    %cst_40 = arith.constant 9.99999974E-6 : f32
    %64 = vector.broadcast %cst_40 : f32 to vector<2x8x1xf32>
    %65 = arith.addf %61, %64 : vector<2x8x1xf32>
    %66 = math.rsqrt %65 : vector<2x8x1xf32>
    %67 = vector.broadcast %66 : vector<2x8x1xf32> to vector<2x8x32xf32>
    %68 = arith.mulf %63, %67 : vector<2x8x32xf32>
    %69 = vector.shape_cast %47 : vector<1x32xf32> to vector<1x1x32xf32>
    %70 = vector.broadcast %69 : vector<1x1x32xf32> to vector<2x8x32xf32>
    %71 = arith.mulf %68, %70 : vector<2x8x32xf32>
    %72 = vector.shape_cast %48 : vector<1x32xf32> to vector<1x1x32xf32>
    %73 = vector.broadcast %72 : vector<1x1x32xf32> to vector<2x8x32xf32>
    %74 = arith.addf %71, %73 : vector<2x8x32xf32>
    %75 = vector.shape_cast %74 : vector<2x8x32xf32> to vector<16x32xf32>
    %76 = arith.truncf %75 : vector<16x32xf32> to vector<16x32xbf16>
    %c0_41 = arith.constant 0 : index
    %c0_42 = arith.constant 0 : index
    %77 = vector.load %arg11[%c0_41, %c0_42] : memref<32x128xbf16, #tpu.memory_space<vmem>>, vector<32x128xbf16>
    %cst_43 = arith.constant dense<0.000000e+00> : vector<16x128xf32>
    %78 = tpu.matmul %76, %77, %cst_43 {dimension_numbers = #tpu.dot_dimension_numbers<[1], [0], [0], [1], [0, 0, 1, 1], [], []>} : vector<16x32xbf16>, vector<32x128xbf16>, vector<16x128xf32> -> vector<16x128xf32>
    %c0_44 = arith.constant 0 : index
    %c0_45 = arith.constant 0 : index
    %79 = vector.load %arg12[%c0_44, %c0_45] : memref<1x128xf32, #tpu.memory_space<vmem>>, vector<1x128xf32>
    %80 = vector.broadcast %79 : vector<1x128xf32> to vector<16x128xf32>
    %81 = arith.addf %78, %80 : vector<16x128xf32>
    %cst_46 = arith.constant 0.000000e+00 : f32
    %82 = vector.broadcast %cst_46 : f32 to vector<16x128xf32>
    %83 = arith.maximumf %81, %82 : vector<16x128xf32>
    %84 = arith.truncf %83 : vector<16x128xf32> to vector<16x128xbf16>
    %c0_47 = arith.constant 0 : index
    %c0_48 = arith.constant 0 : index
    %85 = vector.load %arg13[%c0_47, %c0_48] : memref<128x32xbf16, #tpu.memory_space<vmem>>, vector<128x32xbf16>
    %cst_49 = arith.constant dense<0.000000e+00> : vector<16x32xf32>
    %86 = tpu.matmul %84, %85, %cst_49 {dimension_numbers = #tpu.dot_dimension_numbers<[1], [0], [0], [1], [0, 0, 1, 1], [], []>} : vector<16x128xbf16>, vector<128x32xbf16>, vector<16x32xf32> -> vector<16x32xf32>
    %c0_50 = arith.constant 0 : index
    %c0_51 = arith.constant 0 : index
    %87 = vector.load %arg14[%c0_50, %c0_51] : memref<1x32xf32, #tpu.memory_space<vmem>>, vector<1x32xf32>
    %88 = vector.broadcast %87 : vector<1x32xf32> to vector<16x32xf32>
    %89 = arith.addf %86, %88 : vector<16x32xf32>
    %90 = vector.shape_cast %89 : vector<16x32xf32> to vector<2x8x32xf32>
    %91 = arith.addf %90, %74 : vector<2x8x32xf32>
    %c0_52 = arith.constant 0 : index
    %c0_53 = arith.constant 0 : index
    %92 = vector.load %arg15[%c0_52, %c0_53] : memref<1x32xf32, #tpu.memory_space<vmem>>, vector<1x32xf32>
    %c0_54 = arith.constant 0 : index
    %c0_55 = arith.constant 0 : index
    %93 = vector.load %arg16[%c0_54, %c0_55] : memref<1x32xf32, #tpu.memory_space<vmem>>, vector<1x32xf32>
    %cst_56 = arith.constant dense<0.000000e+00> : vector<2x8xf32>
    %94 = vector.multi_reduction <add>, %91, %cst_56 [2] : vector<2x8x32xf32> to vector<2x8xf32>
    %95 = vector.shape_cast %94 : vector<2x8xf32> to vector<2x8x1xf32>
    %cst_57 = arith.constant 3.200000e+01 : f32
    %96 = vector.broadcast %cst_57 : f32 to vector<2x8x1xf32>
    %97 = arith.divf %95, %96 : vector<2x8x1xf32>
    %98 = arith.mulf %91, %91 : vector<2x8x32xf32>
    %cst_58 = arith.constant dense<0.000000e+00> : vector<2x8xf32>
    %99 = vector.multi_reduction <add>, %98, %cst_58 [2] : vector<2x8x32xf32> to vector<2x8xf32>
    %100 = vector.shape_cast %99 : vector<2x8xf32> to vector<2x8x1xf32>
    %cst_59 = arith.constant 3.200000e+01 : f32
    %101 = vector.broadcast %cst_59 : f32 to vector<2x8x1xf32>
    %102 = arith.divf %100, %101 : vector<2x8x1xf32>
    %103 = arith.mulf %97, %97 : vector<2x8x1xf32>
    %104 = arith.subf %102, %103 : vector<2x8x1xf32>
    %cst_60 = arith.constant 0.000000e+00 : f32
    %105 = vector.broadcast %cst_60 : f32 to vector<2x8x1xf32>
    %106 = arith.maximumf %104, %105 : vector<2x8x1xf32>
    %107 = vector.broadcast %97 : vector<2x8x1xf32> to vector<2x8x32xf32>
    %108 = arith.subf %91, %107 : vector<2x8x32xf32>
    %cst_61 = arith.constant 9.99999974E-6 : f32
    %109 = vector.broadcast %cst_61 : f32 to vector<2x8x1xf32>
    %110 = arith.addf %106, %109 : vector<2x8x1xf32>
    %111 = math.rsqrt %110 : vector<2x8x1xf32>
    %112 = vector.broadcast %111 : vector<2x8x1xf32> to vector<2x8x32xf32>
    %113 = arith.mulf %108, %112 : vector<2x8x32xf32>
    %114 = vector.shape_cast %92 : vector<1x32xf32> to vector<1x1x32xf32>
    %115 = vector.broadcast %114 : vector<1x1x32xf32> to vector<2x8x32xf32>
    %116 = arith.mulf %113, %115 : vector<2x8x32xf32>
    %117 = vector.shape_cast %93 : vector<1x32xf32> to vector<1x1x32xf32>
    %118 = vector.broadcast %117 : vector<1x1x32xf32> to vector<2x8x32xf32>
    %119 = arith.addf %116, %118 : vector<2x8x32xf32>
    %c0_62 = arith.constant 0 : index
    %c0_63 = arith.constant 0 : index
    %c0_64 = arith.constant 0 : index
    %120 = vector.load %arg17[%c0_62, %c0_63, %c0_64] : memref<2x8x32xf32, #tpu.memory_space<vmem>>, vector<2x8x32xf32>
    tpu.vector_store %arg17[%c0_62, %c0_63, %c0_64], %119 {strides = array<i32>} : memref<2x8x32xf32, #tpu.memory_space<vmem>>, vector<2x8x32xf32>,
    return
  }
}

</mosaic_0001>

<bundles_post_ra>
// kernel: tpu_custom_call.1
= control target key start
LH: loop header
LB: loop body
LE: loop exit
PB: predicated region body
PF: predicated region fallthrough
CT: control target
= control target key end

     0   :  { %s3141_s0 = inlined_call_operand.vmem [shape: f32[8,8,8], index: 0, kind: input, shape index: {}]   ;;  %s3142_s1 = inlined_call_operand.hbm [shape: f32[8,8,8], index: 1, kind: input, shape index: {}]   ;;  %s3143_s2 = inlined_call_operand.hbm [shape: f32[8,8,8], index: 2, kind: input, shape index: {}]   ;;  %s3144_s3 = inlined_call_operand.hbm [shape: f32[2,8,32], index: 3, kind: input, shape index: {}]   ;;  %s3145_s4 = inlined_call_operand.hbm [shape: bf16[8,8], index: 4, kind: input, shape index: {}]   ;;  %s3146_s5 = inlined_call_operand.hbm [shape: bf16[8,8], index: 5, kind: input, shape index: {}]   ;;  %s3147_s6 = inlined_call_operand.hbm [shape: bf16[8,8], index: 6, kind: input, shape index: {}]   ;;  %s3148_s7 = inlined_call_operand.vmem [shape: bf16[8,8,32], index: 7, kind: input, shape index: {}]   ;;  %s3149_s8 = inlined_call_operand.vmem [shape: f32[1,32], index: 8, kind: input, shape index: {}]   ;;  %s3150_s9 = inlined_call_operand.vmem [shape: f32[1,32], index: 9, kind: input, shape index: {}]   ;;  %s3151_s10 = inlined_call_operand.vmem [shape: f32[1,32], index: 10, kind: input, shape index: {}]   ;;  %s3152_s11 = inlined_call_operand.hbm [shape: bf16[32,128], index: 11, kind: input, shape index: {}]   ;;  %s3153_s12 = inlined_call_operand.vmem [shape: f32[1,128], index: 12, kind: input, shape index: {}]   ;;  %s3154_s13 = inlined_call_operand.vmem [shape: bf16[128,32], index: 13, kind: input, shape index: {}]   ;;  %s3155_s14 = inlined_call_operand.vmem [shape: f32[1,32], index: 14, kind: input, shape index: {}]   ;;  %s3156_s15 = inlined_call_operand.vmem [shape: f32[1,32], index: 15, kind: input, shape index: {}]   ;;  %s3157_s16 = inlined_call_operand.vmem [shape: f32[1,32], index: 16, kind: input, shape index: {}]   ;;  %s3158_s17 = inlined_call_operand.hbm [shape: f32[2,8,32], index: 17, kind: output, shape index: {}]  }
   0x1   :  { %3161 = sst [smem:[#allocation20_spill]] %s3141_s0 }
   0x2   :  { %3162 = sst [smem:[#allocation21_spill]] %s3142_s1 }
   0x3   :  { %22 = vsyncpa [#allocation3], 0 }
   0x4   :  { %23 = vsyncpa [#allocation6], 0 }
   0x5   :  { %24 = vsyncpa [#allocation9], 0 }
   0x6   :  { %25 = vsyncpa [#allocation12], 0 }
   0x7   :  { %26 = vsyncpa [#allocation4], 0  ;;  %s2596_s24 = smov [#allocation5]   ;;  %s2597_s26 = smov [#allocation8]  }
   0x8   :  { %s46_s25 = sshll.u32 %s2596_s24, 4  ;;  %s71_s27 = sshll.u32 %s2597_s26, 4  ;;  %s47_s25 = int_to_ptr.vmem [resolvable:$true] %s46_s25  ;;  %s72_s27 = int_to_ptr.vmem [resolvable:$true] %s71_s27 }
   0x9   :  { %s2410_s0 = scalar_lea.hbm %s3143_s2, 1024 }
   0xa   :  { %p2411_p0 = scmp.ne.s32.totalorder %s3143_s2, %s2410_s0  ;;  %p2414_p1 = scmp.lt.u32.totalorder %s2410_s0, %s3143_s2 }
   0xc   :  { %p2416_p2 = pnand %p2414_p1, %p2411_p0 }
   0xe   :  { %2419 = shalt.err (!%p2416_p2)
}
   0xf   :  { %s2420_s20 = scalar_lea.vmem %s47_s25, 1024  ;;  %p2425_p4 = scmp.lt.s32.totalorder %s47_s25, %s47_s25 }
  0x10   :  { %p2421_p3 = scmp.ne.s32.totalorder %s47_s25, %s2420_s20  ;;  %p2426_p5 = scmp.lt.s32.totalorder %s2420_s20, %s2420_s20 }
  0x12   :  { %p2427_p6 = por %p2426_p5, %p2425_p4 }
  0x14   :  { %p2428_p7 = pnand %p2427_p6, %p2421_p3 }
  0x16   :  { %2431 = shalt.err (!%p2428_p7)
}
  0x17   :  { %s2598_s21 = smov 128   ;;  %s2599_s22 = smov 8  }
  0x18   :  { %52 = dma.hbm_to_vmem [thread:$0]  %s3143_s2, 1024, %s47_s25, [#allocation6], %s2598_s21, %s2598_s21, %s2599_s22  }
  0x19   :  { %s2432_s29 = scalar_lea.hbm %s3145_s4, 64 }
  0x1a   :  { %p2433_p8 = scmp.ne.s32.totalorder %s3145_s4, %s2432_s29  ;;  %p2436_p9 = scmp.lt.u32.totalorder %s2432_s29, %s3145_s4 }
  0x1c   :  { %p2438_p10 = pnand %p2436_p9, %p2433_p8 }
  0x1e   :  { %2441 = shalt.err (!%p2438_p10)
}
  0x1f   :  { %s2442_s1 = scalar_lea.vmem %s72_s27, 64  ;;  %p2447_p12 = scmp.lt.s32.totalorder %s72_s27, %s72_s27 }
  0x20   :  { %p2443_p11 = scmp.ne.s32.totalorder %s72_s27, %s2442_s1  ;;  %p2448_p13 = scmp.lt.s32.totalorder %s2442_s1, %s2442_s1 }
  0x22   :  { %p2449_p0 = por %p2448_p13, %p2447_p12 }
  0x24   :  { %p2450_p1 = pnand %p2449_p0, %p2443_p11 }
  0x26   :  { %2453 = shalt.err (!%p2450_p1)
}
  0x27   :  { %74 = dma.hbm_to_vmem [thread:$0]  %s3145_s4, 64, %s72_s27, [#allocation9]  }
  0x28   :  { %s2600_s20 = smov [#allocation11]   ;;  %s2601_s24 = smov [#allocation2]  }
  0x29   :  { %s91_s23 = sshll.u32 %s2600_s20, 4  ;;  %s34_s26 = sshll.u32 %s2601_s24, 4  ;;  %s92_s23 = int_to_ptr.vmem [resolvable:$true] %s91_s23  ;;  %s2727_s26 = int_to_ptr.vmem [resolvable:$true] %s34_s26 }
  0x2a   :  { %s2454_s0 = scalar_lea.hbm %s3147_s6, 64 }
  0x2b   :  { %p2455_p2 = scmp.ne.s32.totalorder %s3147_s6, %s2454_s0  ;;  %p2458_p3 = scmp.lt.u32.totalorder %s2454_s0, %s3147_s6 }
  0x2d   :  { %p2460_p4 = pnand %p2458_p3, %p2455_p2 }
  0x2f   :  { %2463 = shalt.err (!%p2460_p4)
}
  0x30   :  { %s2464_s4 = scalar_lea.vmem %s92_s23, 64  ;;  %p2469_p6 = scmp.lt.s32.totalorder %s92_s23, %s92_s23 }
  0x31   :  { %p2465_p5 = scmp.ne.s32.totalorder %s92_s23, %s2464_s4  ;;  %p2470_p7 = scmp.lt.s32.totalorder %s2464_s4, %s2464_s4 }
  0x33   :  { %p2471_p8 = por %p2470_p7, %p2469_p6 }
  0x35   :  { %p2472_p9 = pnand %p2471_p8, %p2465_p5 }
  0x37   :  { %2475 = shalt.err (!%p2472_p9)
}
  0x38   :  { %94 = dma.hbm_to_vmem [thread:$0]  %s3147_s6, 64, %s92_s23, [#allocation12]  }
  0x39   :  { %s3163_s24 = sld [smem:[#allocation21_spill]] }
  0x3f   :  { %s2476_s28 = scalar_lea.hbm %s3163_s24, 1024 }
  0x40   :  { %p2477_p10 = scmp.ne.s32.totalorder %s3163_s24, %s2476_s28  ;;  %p2480_p11 = scmp.lt.u32.totalorder %s2476_s28, %s3163_s24 }
  0x42   :  { %p2482_p12 = pnand %p2480_p11, %p2477_p10 }
  0x44   :  { %2485 = shalt.err (!%p2482_p12)
}
  0x45   :  { %s2486_s19 = scalar_lea.vmem %s2727_s26, 1024  ;;  %p2491_p0 = scmp.lt.s32.totalorder %s2727_s26, %s2727_s26 }
  0x46   :  { %p2487_p13 = scmp.ne.s32.totalorder %s2727_s26, %s2486_s19  ;;  %p2492_p1 = scmp.lt.s32.totalorder %s2486_s19, %s2486_s19 }
  0x48   :  { %p2493_p2 = por %p2492_p1, %p2491_p0 }
  0x4a   :  { %p2494_p3 = pnand %p2493_p2, %p2487_p13 }
  0x4c   :  { %2497 = shalt.err (!%p2494_p3)
}
  0x4d   :  { %40 = dma.hbm_to_vmem [thread:$0]  %s3163_s24, 1024, %s2727_s26, [#allocation3], %s2598_s21, %s2598_s21, %s2599_s22  }
  0x4e   :  { %s2602_s1 = smov [#allocation7]   ;;  %s2603_s27 = smov [#allocation10]  }
  0x4f   :  { %s58_s4 = sshll.u32 %s2602_s1, 4  ;;  %s81_s2 = sshll.u32 %s2603_s27, 4  ;;  %s59_s4 = int_to_ptr.vmem [resolvable:$true] %s58_s4  ;;  %s82_s2 = int_to_ptr.vmem [resolvable:$true] %s81_s2 }
  0x50   :  { %s2498_s28 = scalar_lea.hbm %s3144_s3, 256 }
  0x51   :  { %p2499_p4 = scmp.ne.s32.totalorder %s3144_s3, %s2498_s28  ;;  %p2502_p5 = scmp.lt.u32.totalorder %s2498_s28, %s3144_s3 }
  0x53   :  { %p2504_p6 = pnand %p2502_p5, %p2499_p4 }
  0x55   :  { %2507 = shalt.err (!%p2504_p6)
}
  0x56   :  { %s2508_s26 = scalar_lea.vmem %s59_s4, 256  ;;  %p2513_p8 = scmp.lt.s32.totalorder %s59_s4, %s59_s4 }
  0x57   :  { %p2509_p7 = scmp.ne.s32.totalorder %s59_s4, %s2508_s26  ;;  %p2514_p9 = scmp.lt.s32.totalorder %s2508_s26, %s2508_s26 }
  0x59   :  { %p2515_p10 = por %p2514_p9, %p2513_p8 }
  0x5b   :  { %p2516_p11 = pnand %p2515_p10, %p2509_p7 }
  0x5d   :  { %2519 = shalt.err (!%p2516_p11)
}
  0x5e   :  { %64 = dma.hbm_to_vmem [thread:$0]  %s3144_s3, 256, %s59_s4, [#allocation6], %s2598_s21, %s2598_s21, %s2599_s22  }
  0x5f   :  { %s2520_s1 = scalar_lea.hbm %s3146_s5, 64 }
  0x60   :  { %p2521_p12 = scmp.ne.s32.totalorder %s3146_s5, %s2520_s1  ;;  %p2524_p13 = scmp.lt.u32.totalorder %s2520_s1, %s3146_s5 }
  0x62   :  { %p2526_p0 = pnand %p2524_p13, %p2521_p12 }
  0x64   :  { %2529 = shalt.err (!%p2526_p0)
}
  0x65   :  { %s2530_s29 = scalar_lea.vmem %s82_s2, 64  ;;  %p2535_p2 = scmp.lt.s32.totalorder %s82_s2, %s82_s2 }
  0x66   :  { %p2531_p1 = scmp.ne.s32.totalorder %s82_s2, %s2530_s29  ;;  %p2536_p3 = scmp.lt.s32.totalorder %s2530_s29, %s2530_s29 }
  0x68   :  { %p2537_p4 = por %p2536_p3, %p2535_p2 }
  0x6a   :  { %p2538_p5 = pnand %p2537_p4, %p2531_p1 }
  0x6c   :  { %2541 = shalt.err (!%p2538_p5)
}
  0x6d   :  { %84 = dma.hbm_to_vmem [thread:$0]  %s3146_s5, 64, %s82_s2, [#allocation9]  }
  0x6e   :  { %s2604_s30 = smov [#allocation13]   ;;  %s2542_s24 = scalar_lea.hbm %s3152_s11, 256 }
  0x6f   :  { %s108_s0 = sshll.u32 %s2604_s30, 4  ;;  %p2543_p6 = scmp.ne.s32.totalorder %s3152_s11, %s2542_s24  ;;  %s109_s0 = int_to_ptr.vmem [resolvable:$true] %s108_s0 }
  0x70   :  { %p2546_p7 = scmp.lt.u32.totalorder %s2542_s24, %s3152_s11 }
  0x72   :  { %p2548_p8 = pnand %p2546_p7, %p2543_p6 }
  0x74   :  { %2551 = shalt.err (!%p2548_p8)
}
  0x75   :  { %s2552_s27 = scalar_lea.vmem %s109_s0, 256  ;;  %p2557_p10 = scmp.lt.s32.totalorder %s109_s0, %s109_s0 }
  0x76   :  { %p2553_p9 = scmp.ne.s32.totalorder %s109_s0, %s2552_s27  ;;  %p2558_p11 = scmp.lt.s32.totalorder %s2552_s27, %s2552_s27 }
  0x78   :  { %p2559_p12 = por %p2558_p11, %p2557_p10 }
  0x7a   :  { %p2560_p13 = pnand %p2559_p12, %p2553_p9 }
  0x7c   :  { %2563 = shalt.err (!%p2560_p13)
}
  0x7d   :  { %s2605_s5 = smov 64   ;;  %s2606_s2 = smov 4  }
  0x7e   :  { %114 = dma.hbm_to_vmem [thread:$0]  %s3152_s11, 256, %s109_s0, [#allocation12], %s2605_s5, %s2605_s5, %s2606_s2  }
  0x7f   :  { %2586 = dma.done.wait [#allocation3], 1024  }
  0x80   :  { %2587 = vsyncadd [#allocation3], 4294966272 }
  0x81   :  { %2588 = dma.done.wait [#allocation6], 1280  }
  0x82   :  { %2589 = vsyncadd [#allocation6], 4294966016 }
  0x83   :  { %2590 = dma.done.wait [#allocation9], 128  }
  0x84   :  { %2591 = vsyncadd [#allocation9], 4294967168 }
  0x85   :  { %2592 = dma.done.wait [#allocation12], 320  }
  0x86   :  { %2593 = vsyncadd [#allocation12], 4294966976  ;;  %vm173_vm0 = vcmask 1043456   ;;  %v159_v0 = vld [vmem:[#allocation8] sm:$0xf]  ;;  %s3164_s3 = sld [smem:[#allocation20_spill]] }
  0x87   :  { %vm160_vm1 = vcmask 64512   ;;  %2343 = vmatprep.subr.msk.bf16.mxu0 %vm173_vm0, %v159_v0  ;;  %v175_v3 = vsel %vm173_vm0, %v159_v0, 0  ;;  %v254_v7 = vld [vmem:[#allocation10] sm:$0xf]  ;;  %v242_v15 = vld [vmem:[#allocation2] sm:$0xff]  ;;  %v243_v16 = vld [vmem:[#allocation2 + $0x8] sm:$0xff] }
  0x88   :  { %2142 = vmatpush3.bf16.msra.mxu0 %v175_v3  ;;  %v268_v11 = vsel %vm173_vm0, %v254_v7, 0  ;;  %v250_v18 = vpack.c.bf16 %v243_v16, %v242_v15  ;;  %v244_v19 = vld [vmem:[#allocation2 + $0x10] sm:$0xff]  ;;  %v245_v20 = vld [vmem:[#allocation2 + $0x18] sm:$0xff]  ;;  %v246_v21 = vld [vmem:[#allocation2 + $0x20] sm:$0xff]  ;;  %v2607_v42 = vmov 0.0   ;;  %vm2608_vm2 = vmmov 0  }
  0x89   :  { %2344 = vmatprep.subr.msk.bf16.mxu0 %vm173_vm0, %v254_v7  ;;  %v247_v22 = vld [vmem:[#allocation2 + $0x28] sm:$0xff]  ;;  %v251_v23 = vpack.c.bf16 %v245_v20, %v244_v19  ;;  %v248_v25 = vld [vmem:[#allocation2 + $0x30] sm:$0xff]  ;;  %v249_v26 = vld [vmem:[#allocation2 + $0x38] sm:$0xff]  ;;  %2171 = vmatprep.subr.bf16.mxu1 %v2607_v42  ;;  %vm1676_vm3 = vcmask 261120   ;;  %s2609_s2 = smov [#allocation14]  }
  0x8a   :  { %v252_v24 = vpack.c.bf16 %v247_v22, %v246_v21  ;;  %v253_v27 = vpack.c.bf16 %v249_v26, %v248_v25  ;;  %v347_v28 = vld [vmem:[#allocation11] sm:$0xf]  ;;  %v335_v30 = vld [vmem:[#allocation5] sm:$0xff]  ;;  %v336_v31 = vld [vmem:[#allocation5 + $0x8] sm:$0xff]  ;;  %2173 = vmatprep.mubr.msk.bf16.mxu1 %vm2608_vm2, %v2607_v42  ;;  %s1997_s25 = sshll.u32 %s2609_s2, 4  ;;  %s1998_s25 = int_to_ptr.vmem [resolvable:$true] %s1997_s25 }
  0x8b   :  { %v361_v29 = vsel %vm173_vm0, %v347_v28, 0  ;;  %v343_v32 = vpack.c.bf16 %v336_v31, %v335_v30  ;;  %v337_v33 = vld [vmem:[#allocation5 + $0x10] sm:$0xff]  ;;  %v338_v34 = vld [vmem:[#allocation5 + $0x18] sm:$0xff]  ;;  %v339_v36 = vld [vmem:[#allocation5 + $0x20] sm:$0xff]  ;;  %p2569_p1 = scmp.lt.s32.totalorder %s1998_s25, %s1998_s25 }
  0x8c   :  { %v147_v1 = vld [vmem:[%s3164_s3] sm:$0xff]  ;;  %v148_v2 = vld [vmem:[%s3164_s3 + $0x8] sm:$0xff]  ;;  %v149_v5 = vld [vmem:[%s3164_s3 + $0x10] sm:$0xff]  ;;  %v344_v35 = vpack.c.bf16 %v338_v34, %v337_v33 }
  0x8d   :  { %v155_v4 = vpack.c.bf16 %v148_v2, %v147_v1  ;;  %v150_v6 = vld [vmem:[%s3164_s3 + $0x18] sm:$0xff]  ;;  %v151_v9 = vld [vmem:[%s3164_s3 + $0x20] sm:$0xff]  ;;  %v152_v10 = vld [vmem:[%s3164_s3 + $0x28] sm:$0xff] }
  0x8e   :  { %v156_v8 = vpack.c.bf16 %v150_v6, %v149_v5  ;;  %v157_v12 = vpack.c.bf16 %v152_v10, %v151_v9  ;;  %v153_v13 = vld [vmem:[%s3164_s3 + $0x30] sm:$0xff]  ;;  %v154_v14 = vld [vmem:[%s3164_s3 + $0x38] sm:$0xff]  ;;  %v340_v37 = vld [vmem:[#allocation5 + $0x28] sm:$0xff] }
  0x8f   :  { %2143 = vmatprep.mubr.msk.bf16.mxu0 %vm160_vm1, %v155_v4  ;;  %v158_v17 = vpack.c.bf16 %v154_v14, %v153_v13  ;;  %v345_v38 = vpack.c.bf16 %v340_v37, %v339_v36  ;;  %v341_v39 = vld [vmem:[#allocation5 + $0x30] sm:$0xff]  ;;  %v342_v40 = vld [vmem:[#allocation5 + $0x38] sm:$0xff] }
  0x90   :  { %2144 = vmatmul.mubr.msk.bf16.vlgmr.msra.gmra.mrb[0].mxu0 %vm160_vm1, %v156_v8  ;;  %v346_v41 = vpack.c.bf16 %v342_v40, %v341_v39 }
  0x91   :  { %2152 = vmatpush3.bf16.msra.mxu0 %v268_v11  ;;  %2147 = vmatprep.mubr.msk.bf16.mxu0 %vm160_vm1, %v157_v12 }
  0x92   :  { %2345 = vmatprep.subr.msk.bf16.mxu0 %vm173_vm0, %v347_v28 }
  0x98   :  { %2148 = vmatmul.mubr.msk.bf16.gmra.mrb[4].mxu0 %vm160_vm1, %v158_v17 }
  0x99   :  { %2153 = vmatprep.mubr.msk.bf16.mxu0 %vm160_vm1, %v250_v18 }
  0xa0   :  { %2154 = vmatmul.mubr.msk.bf16.vlgmr.msra.gmra.mrb[8].mxu0 %vm160_vm1, %v251_v23 }
  0xa1   :  { %2157 = vmatprep.mubr.msk.bf16.mxu0 %vm160_vm1, %v252_v24  ;;  %2162 = vmatpush3.bf16.msra.mxu0 %v361_v29 }
  0xa2   :  { %2183 = vmatprep.subr.bf16.mxu0 %v2607_v42 }
  0xa8   :  { %2158 = vmatmul.mubr.msk.bf16.gmra.mrb[12].mxu0 %vm160_vm1, %v253_v27 }
  0xa9   :  { %2163 = vmatprep.mubr.msk.bf16.mxu0 %vm160_vm1, %v343_v32 }
  0xb0   :  { %2164 = vmatmul.mubr.msk.bf16.vlgmr.msra.gmra.mrb[16].mxu0 %vm160_vm1, %v344_v35 }
  0xb1   :  { %2167 = vmatprep.mubr.msk.bf16.mxu0 %vm160_vm1, %v345_v38 }
  0xb8   :  { %2168 = vmatmul.mubr.msk.bf16.gmra.mrb[20].mxu0 %vm160_vm1, %v346_v41 }
  0xb9   :  { %2185 = vmatprep.mubr.msk.bf16.mxu0 %vm2608_vm2, %v2607_v42 }
 0x163   :  { %v2145_v43 = vpop.f32.mrb[0].mxu0 }
 0x164   :  { %v211_v44 = vpop.f32.mrb[1].mxu0  ;;  %v430_v61 = vpack.c.bf16 %v2145_v43, %v2145_v43 }
 0x165   :  { %v2146_v45 = vpop.f32.mrb[2].mxu0  ;;  %v428_v63 = vpack.c.bf16 %v211_v44, %v211_v44 }
 0x166   :  { %v214_v46 = vpop.f32.mrb[3].mxu0  ;;  %v431_v12 = vpack.c.bf16 %v2146_v45, %v2146_v45 }
 0x167   :  { %v429_v7 = vpack.c.bf16 %v214_v46, %v214_v46 }
 0x16b   :  { %v2149_v47 = vpop.f32.mrb[4].mxu0 }
 0x16c   :  { %v227_v48 = vpop.f32.mrb[5].mxu0  ;;  %v434_v13 = vpack.c.bf16 %v2149_v47, %v2149_v47 }
 0x16d   :  { %v2848_v49 = vpop.f32.mrb[6].mxu0  ;;  %v432_v8 = vpack.c.bf16 %v227_v48, %v227_v48 }
 0x16e   :  { %v230_v50 = vpop.f32.mrb[7].mxu0  ;;  %v435_v18 = vpack.c.bf16 %v2848_v49, %v2848_v49 }
 0x16f   :  { %v433_v16 = vpack.c.bf16 %v230_v50, %v230_v50 }
 0x173   :  { %v2155_v51 = vpop.f32.mrb[8].mxu0 }
 0x174   :  { %v438_v52 = vpack.c.bf16 %v2155_v51, %v2155_v51  ;;  %v304_v53 = vpop.f32.mrb[9].mxu0 }
 0x175   :  { %v436_v54 = vpack.c.bf16 %v304_v53, %v304_v53  ;;  %v2156_v55 = vpop.f32.mrb[10].mxu0 }
 0x176   :  { %v540_v56 = vsel %vm160_vm1, %v438_v52, 0  ;;  %v307_v57 = vpop.f32.mrb[11].mxu0  ;;  %v439_v6 = vpack.c.bf16 %v2156_v55, %v2156_v55 }
 0x177   :  { %2184 = vmatpush3.bf16.xpose.msra.mxu0 %v540_v56  ;;  %v448_v58 = vsel %vm160_vm1, %v436_v54, 0  ;;  %v437_v59 = vpack.c.bf16 %v307_v57, %v307_v57 }
 0x178   :  { %2172 = vmatpush3.bf16.xpose.msra.mxu1 %v448_v58  ;;  %2195 = vmatprep.subr.bf16.mxu0 %v2607_v42  ;;  %v586_v10 = vsel %vm160_vm1, %v439_v6, 0 }
 0x179   :  { %2177 = vmatprep.subr.bf16.mxu1 %v2607_v42  ;;  %v494_v3 = vsel %vm160_vm1, %v437_v59, 0 }
 0x17b   :  { %v2159_v60 = vpop.f32.mrb[12].mxu0 }
 0x17c   :  { %v320_v62 = vpop.f32.mrb[13].mxu0  ;;  %v442_v5 = vpack.c.bf16 %v2159_v60, %v2159_v60 }
 0x17d   :  { %v440_v0 = vpack.c.bf16 %v320_v62, %v320_v62  ;;  %v2160_v1 = vpop.f32.mrb[14].mxu0 }
 0x17e   :  { %2186 = vmatmul.mubr.msk.bf16.vlgmr.msra.gmra.mrb[24].mxu0 %vm160_vm1, %v430_v61  ;;  %v323_v2 = vpop.f32.mrb[15].mxu0  ;;  %v724_v9 = vsel %vm160_vm1, %v442_v5, 0  ;;  %v443_v15 = vpack.c.bf16 %v2160_v1, %v2160_v1 }
 0x17f   :  { %v632_v4 = vsel %vm160_vm1, %v440_v0, 0  ;;  %2174 = vmatmul.mubr.msk.bf16.vlgmr.msra.gmra.mrb[0].mxu1 %vm160_vm1, %v428_v63  ;;  %2197 = vmatprep.mubr.msk.bf16.mxu0 %vm2608_vm2, %v2607_v42  ;;  %v441_v11 = vpack.c.bf16 %v323_v2, %v323_v2 }
 0x180   :  { %2178 = vmatpush3.bf16.xpose.msra.mxu1 %v494_v3  ;;  %2196 = vmatpush3.bf16.xpose.msra.mxu0 %v632_v4  ;;  %v770_v17 = vsel %vm160_vm1, %v443_v15, 0 }
 0x181   :  { %2179 = vmatprep.mubr.msk.bf16.mxu1 %vm2608_vm2, %v2607_v42  ;;  %2189 = vmatprep.subr.bf16.mxu1 %v2607_v42  ;;  %v678_v14 = vsel %vm160_vm1, %v441_v11, 0 }
 0x182   :  { %2207 = vmatprep.subr.bf16.mxu0 %v2607_v42 }
 0x183   :  { %v2892_v19 = vpop.f32.mrb[16].mxu0 }
 0x184   :  { %v397_v20 = vpop.f32.mrb[17].mxu0 }
 0x185   :  { %v916_v21 = vpack.c.bf16 %v397_v20, %v397_v20  ;;  %v2894_v22 = vpop.f32.mrb[18].mxu0 }
 0x186   :  { %v400_v23 = vpop.f32.mrb[19].mxu0 }
 0x187   :  { %2180 = vmatmul.mubr.msk.bf16.vlgmr.msra.gmra.mrb[4].mxu1 %vm160_vm1, %v429_v7  ;;  %2198 = vmatmul.mubr.msk.bf16.vlgmr.msra.gmra.mrb[28].mxu0 %vm160_vm1, %v432_v8  ;;  %v928_v24 = vsel %vm173_vm0, %v916_v21, 0  ;;  %v917_v25 = vpack.c.bf16 %v400_v23, %v400_v23 }
 0x188   :  { %2190 = vmatpush3.bf16.xpose.msra.mxu1 %v586_v10  ;;  %2208 = vmatpush3.bf16.xpose.msra.mxu0 %v724_v9 }
 0x189   :  { %2191 = vmatprep.mubr.msk.bf16.mxu1 %vm2608_vm2, %v2607_v42  ;;  %2209 = vmatprep.mubr.msk.bf16.mxu0 %vm2608_vm2, %v2607_v42  ;;  %v974_v26 = vsel %vm173_vm0, %v917_v25, 0 }
 0x18a   :  { %2201 = vmatprep.subr.bf16.mxu1 %v2607_v42  ;;  %2219 = vmatprep.subr.bf16.mxu0 %v2607_v42 }
 0x18b   :  { %v2899_v27 = vpop.f32.mrb[20].mxu0 }
 0x18c   :  { %v2902_v28 = vpop.f32.mrb[21].mxu0 }
 0x18d   :  { %v2904_v29 = vpop.f32.mrb[22].mxu0 }
 0x18e   :  { %v2906_v30 = vpop.f32.mrb[23].mxu0 }
 0x18f   :  { %2192 = vmatmul.mubr.msk.bf16.vlgmr.msra.gmra.mrb[8].mxu1 %vm160_vm1, %v431_v12  ;;  %2210 = vmatmul.mubr.msk.bf16.vlgmr.msra.gmra.mrb[32].mxu0 %vm160_vm1, %v434_v13 }
 0x190   :  { %2202 = vmatpush3.bf16.xpose.msra.mxu1 %v678_v14  ;;  %2203 = vmatprep.mubr.msk.bf16.mxu1 %vm2608_vm2, %v2607_v42 }
 0x191   :  { %2213 = vmatprep.subr.bf16.mxu1 %v2607_v42  ;;  %2221 = vmatprep.mubr.msk.bf16.mxu0 %vm2608_vm2, %v2607_v42 }
 0x192   :  { %2220 = vmatpush3.bf16.msra.mxu0 %v928_v24 }
 0x193   :  { %2231 = vmatprep.subr.bf16.mxu0 %v2607_v42 }
 0x197   :  { %2204 = vmatmul.mubr.msk.bf16.vlgmr.msra.gmra.mrb[12].mxu1 %vm160_vm1, %v433_v16 }
 0x198   :  { %2214 = vmatpush3.bf16.xpose.msra.mxu1 %v770_v17  ;;  %2215 = vmatprep.mubr.msk.bf16.mxu1 %vm2608_vm2, %v2607_v42 }
 0x199   :  { %2225 = vmatprep.subr.bf16.mxu1 %v2607_v42 }
 0x19f   :  { %2216 = vmatmul.mubr.msk.bf16.vlgmr.msra.gmra.mrb[16].mxu1 %vm160_vm1, %v435_v18 }
 0x1a0   :  { %2227 = vmatprep.mubr.msk.bf16.mxu1 %vm2608_vm2, %v2607_v42  ;;  %2226 = vmatpush3.bf16.msra.mxu1 %v974_v26 }
 0x1a1   :  { %2237 = vmatprep.subr.bf16.mxu1 %v2607_v42 }
 0x251   :  { %v576_v31 = vpop.f32.mrb[24].mxu0 }
 0x252   :  { %v814_v32 = vmul.f32 0.25, %v576_v31  ;;  %v484_v33 = vpop.f32.mrb[0].mxu1  ;;  %v2187_v34 = vpop.f32.mrb[25].mxu0 }
 0x253   :  { %v812_v35 = vmul.f32 0.25, %v484_v33  ;;  %v2175_v36 = vpop.f32.mrb[1].mxu1  ;;  %v579_v37 = vpop.f32.mrb[26].mxu0 }
 0x254   :  { %v487_v38 = vpop.f32.mrb[2].mxu1  ;;  %v2188_v39 = vpop.f32.mrb[27].mxu0  ;;  %v826_v40 = vsel %vm160_vm1, %v814_v32, -inf }
 0x255   :  { %v2176_v41 = vpop.f32.mrb[3].mxu1  ;;  %827 = vmax.xlane.f32.xlu1 %v826_v40  ;;  %v820_v43 = vsel %vm160_vm1, %v812_v35, -inf }
 0x256   :  { %821 = vmax.xlane.f32.xlu0 %v820_v43 }
 0x25a   :  { %v530_v44 = vpop.f32.mrb[4].mxu1  ;;  %v668_v45 = vpop.f32.mrb[28].mxu0 }
 0x25b   :  { %v813_v46 = vmul.f32 0.25, %v530_v44  ;;  %v2181_v47 = vpop.f32.mrb[5].mxu1  ;;  %v2199_v48 = vpop.f32.mrb[29].mxu0  ;;  %v816_v51 = vmul.f32 0.25, %v668_v45 }
 0x25c   :  { %v533_v49 = vpop.f32.mrb[6].mxu1  ;;  %v671_v50 = vpop.f32.mrb[30].mxu0 }
 0x25d   :  { %v2182_v52 = vpop.f32.mrb[7].mxu1  ;;  %v2200_v53 = vpop.f32.mrb[31].mxu0  ;;  %v823_v54 = vsel %vm160_vm1, %v813_v46, -inf  ;;  %v832_v55 = vsel %vm160_vm1, %v816_v51, -inf }
 0x25e   :  { %824 = vmax.xlane.f32.xlu0 %v823_v54 }
 0x262   :  { %v622_v56 = vpop.f32.mrb[8].mxu1  ;;  %833 = vmax.xlane.f32.xlu0 %v832_v55  ;;  %v760_v57 = vpop.f32.mrb[32].mxu0 }
 0x263   :  { %v815_v58 = vmul.f32 0.25, %v622_v56  ;;  %v818_v59 = vmul.f32 0.25, %v760_v57  ;;  %v2193_v60 = vpop.f32.mrb[9].mxu1  ;;  %v2211_v61 = vpop.f32.mrb[33].mxu0 }
 0x264   :  { %v625_v62 = vpop.f32.mrb[10].mxu1  ;;  %v763_v63 = vpop.f32.mrb[34].mxu0 }
 0x265   :  { %v2194_v0 = vpop.f32.mrb[11].mxu1  ;;  %v2212_v1 = vpop.f32.mrb[35].mxu0  ;;  %v829_v2 = vsel %vm160_vm1, %v815_v58, -inf  ;;  %v838_v3 = vsel %vm160_vm1, %v818_v59, -inf }
 0x266   :  { %830 = vmax.xlane.f32.xlu1 %v829_v2  ;;  %839 = vmax.xlane.f32.xlu0 %v838_v3  ;;  %v918_v3 = vpack.c.bf16 %v2892_v19, %v2892_v19 }
 0x26a   :  { %v714_v4 = vpop.f32.mrb[12].mxu1 }
 0x26b   :  { %v817_v5 = vmul.f32 0.25, %v714_v4  ;;  %v2205_v6 = vpop.f32.mrb[13].mxu1 }
 0x26c   :  { %v717_v7 = vpop.f32.mrb[14].mxu1 }
 0x26d   :  { %v2206_v8 = vpop.f32.mrb[15].mxu1  ;;  %v835_v9 = vsel %vm160_vm1, %v817_v5, -inf }
 0x26e   :  { %836 = vmax.xlane.f32.xlu1 %v835_v9  ;;  %v1020_v8 = vsel %vm173_vm0, %v918_v3, 0 }
 0x272   :  { %v806_v10 = vpop.f32.mrb[16].mxu1 }
 0x273   :  { %v819_v11 = vmul.f32 0.25, %v806_v10  ;;  %v2217_v12 = vpop.f32.mrb[17].mxu1 }
 0x274   :  { %v809_v13 = vpop.f32.mrb[18].mxu1  ;;  %v919_v12 = vpack.c.bf16 %v2894_v22, %v2894_v22 }
 0x275   :  { %v2218_v14 = vpop.f32.mrb[19].mxu1  ;;  %v841_v15 = vsel %vm160_vm1, %v819_v11, -inf  ;;  %v920_v13 = vpack.c.bf16 %v2902_v28, %v2902_v28 }
 0x276   :  { %842 = vmax.xlane.f32.xlu1 %v841_v15 }
 0x2e2   :  { %v828_v16 = vpop.xlane.xlu1 %827 }
 0x2e3   :  { %v846_v17 = vsub.f32 %v814_v32, %v828_v16  ;;  %v822_v18 = vpop.xlane.xlu0 %821 }
 0x2e4   :  { %v844_v20 = vsub.f32 %v812_v35, %v822_v18  ;;  %v1066_v18 = vsel %vm173_vm0, %v919_v12, 0 }
 0x2e5   :  { %v856_v21 = vmul.f32 1.442695, %v846_v17 }
 0x2e6   :  { %v852_v23 = vmul.f32 1.442695, %v844_v20  ;;  %v1112_v20 = vsel %vm173_vm0, %v920_v13, 0 }
 0x2e8   :  { %2370 = vpow2.f32 %v852_v23  ;;  %v922_v23 = vpack.c.bf16 %v2899_v27, %v2899_v27 }
 0x2e9   :  { %2372 = vpow2.f32 %v856_v21 }
 0x2eb   :  { %v825_v24 = vpop.xlane.xlu0 %824 }
 0x2ec   :  { %v845_v25 = vsub.f32 %v813_v46, %v825_v24  ;;  %v921_v24 = vpack.c.bf16 %v2906_v30, %v2906_v30 }
 0x2ee   :  { %v854_v26 = vmul.f32 1.442695, %v845_v25 }
 0x2ef   :  { %v834_v31 = vpop.xlane.xlu0 %833 }
 0x2f0   :  { %2374 = vpow2.f32 %v854_v26  ;;  %v848_v33 = vsub.f32 %v816_v51, %v834_v31 }
 0x2f2   :  { %v2371_v34 = vpop.eup %2370  ;;  %v860_v36 = vmul.f32 1.442695, %v848_v33 }
 0x2f3   :  { %v831_v37 = vpop.xlane.xlu1 %830  ;;  %v840_v38 = vpop.xlane.xlu0 %839  ;;  %v868_v39 = vsel %vm160_vm1, %v2371_v34, 0.0 }
 0x2f4   :  { %v2373_v40 = vpop.eup %2372  ;;  %2376 = vpow2.f32 %v860_v36  ;;  %v847_v32 = vsub.f32 %v815_v58, %v831_v37  ;;  %v850_v35 = vsub.f32 %v818_v59, %v840_v38  ;;  %869 = vadd.xlane.f32.xlu0 %v868_v39  ;;  %v1158_v36 = vsel %vm173_vm0, %v921_v24, 0 }
 0x2f5   :  { %v874_v44 = vsel %vm160_vm1, %v2373_v40, 0.0  ;;  %v923_v38 = vpack.c.bf16 %v2904_v29, %v2904_v29 }
 0x2f6   :  { %v858_v41 = vmul.f32 1.442695, %v847_v32  ;;  %v864_v43 = vmul.f32 1.442695, %v850_v35 }
 0x2f7   :  { %v1250_v35 = vsel %vm173_vm0, %v923_v38, 0 }
 0x2f8   :  { %2378 = vpow2.f32 %v858_v41  ;;  %875 = vadd.xlane.f32.xlu0 %v874_v44  ;;  %v1300_v44 = vld [vmem:[%s3148_s7] sm:$0xf] }
 0x2f9   :  { %2380 = vpow2.f32 %v864_v43 }
 0x2fa   :  { %v2375_v45 = vpop.eup %2374 }
 0x2fb   :  { %v837_v46 = vpop.xlane.xlu1 %836  ;;  %v871_v47 = vsel %vm160_vm1, %v2375_v45, 0.0 }
 0x2fc   :  { %v849_v48 = vsub.f32 %v817_v5, %v837_v46  ;;  %872 = vadd.xlane.f32.xlu1 %v871_v47  ;;  %v1301_v46 = vld [vmem:[%s3148_s7 + $0x4] sm:$0xf] }
 0x2fd   :  { %v1358_v47 = vsel %vm173_vm0, %v1301_v46, 0 }
 0x2fe   :  { %v2377_v49 = vpop.eup %2376  ;;  %v862_v50 = vmul.f32 1.442695, %v849_v48  ;;  %v1302_v48 = vld [vmem:[%s3148_s7 + $0x8] sm:$0xf] }
 0x2ff   :  { %v880_v51 = vsel %vm160_vm1, %v2377_v49, 0.0 }
 0x300   :  { %2382 = vpow2.f32 %v862_v50  ;;  %881 = vadd.xlane.f32.xlu0 %v880_v51 }
 0x302   :  { %v2379_v52 = vpop.eup %2378 }
 0x303   :  { %v2920_v53 = vpop.eup %2380  ;;  %v843_v54 = vpop.xlane.xlu1 %842  ;;  %v877_v55 = vsel %vm160_vm1, %v2379_v52, 0.0 }
 0x304   :  { %v851_v56 = vsub.f32 %v819_v11, %v843_v54  ;;  %878 = vadd.xlane.f32.xlu1 %v877_v55  ;;  %v886_v57 = vsel %vm160_vm1, %v2920_v53, 0.0  ;;  %v1303_v55 = vld [vmem:[%s3148_s7 + $0xc] sm:$0xf] }
 0x305   :  { %887 = vadd.xlane.f32.xlu0 %v886_v57 }
 0x306   :  { %v866_v58 = vmul.f32 1.442695, %v851_v56  ;;  %v1304_v56 = vld [vmem:[%s3148_s7 + $0x10] sm:$0xf] }
 0x308   :  { %2384 = vpow2.f32 %v866_v58 }
 0x30a   :  { %v2925_v59 = vpop.eup %2382 }
 0x30b   :  { %v883_v60 = vsel %vm160_vm1, %v2925_v59, 0.0 }
 0x30c   :  { %884 = vadd.xlane.f32.xlu1 %v883_v60 }
 0x312   :  { %v2929_v61 = vpop.eup %2384 }
 0x313   :  { %v889_v62 = vsel %vm160_vm1, %v2929_v61, 0.0 }
 0x314   :  { %890 = vadd.xlane.f32.xlu1 %v889_v62 }
 0x381   :  { %v870_v63 = vpop.xlane.xlu0 %869 }
 0x382   :  { %2386 = vrcp.f32 %v870_v63  ;;  %v1450_v63 = vsel %vm173_vm0, %v1303_v55, 0 }
 0x385   :  { %v876_v0 = vpop.xlane.xlu0 %875 }
 0x386   :  { %2388 = vrcp.f32 %v876_v0  ;;  %v1496_v0 = vsel %vm173_vm0, %v1304_v56, 0 }
 0x389   :  { %v873_v1 = vpop.xlane.xlu1 %872 }
 0x38a   :  { %2390 = vrcp.f32 %v873_v1 }
 0x38c   :  { %v2387_v2 = vpop.eup %2386 }
 0x38d   :  { %v900_v4 = vmul.f32 %v2387_v2, %v2371_v34  ;;  %v882_v5 = vpop.xlane.xlu0 %881  ;;  %v1204_v34 = vsel %vm173_vm0, %v922_v23, 0 }
 0x38e   :  { %2392 = vrcp.f32 %v882_v5  ;;  %v1305_v5 = vld [vmem:[%s3148_s7 + $0x14] sm:$0xf] }
 0x38f   :  { %v908_v6 = vpack.c.bf16 %v900_v4, %v900_v4  ;;  %v1542_v12 = vsel %vm173_vm0, %v1305_v5, 0  ;;  %v2048_v5 = vld [vmem:[%s3149_s8] ss:$0 sm:$0xff] }
 0x390   :  { %v2389_v7 = vpop.eup %2388 }
 0x391   :  { %v879_v9 = vpop.xlane.xlu1 %878  ;;  %2222 = vmatmul.mubr.msk.bf16.vlgmr.msra.gmra.mrb[36].mxu0 %vm160_vm1, %v908_v6  ;;  %v902_v10 = vmul.f32 %v2389_v7, %v2373_v40  ;;  %v1306_v6 = vld [vmem:[%s3148_s7 + $0x18] sm:$0xf] }
 0x392   :  { %2394 = vrcp.f32 %v879_v9  ;;  %2232 = vmatpush3.bf16.msra.mxu0 %v1020_v8  ;;  %2233 = vmatprep.mubr.msk.bf16.mxu0 %vm2608_vm2, %v2607_v42  ;;  %v888_v11 = vpop.xlane.xlu0 %887  ;;  %v1588_v13 = vsel %vm173_vm0, %v1306_v6, 0 }
 0x393   :  { %2243 = vmatprep.subr.bf16.mxu0 %v2607_v42  ;;  %2396 = vrcp.f32 %v888_v11  ;;  %v910_v16 = vpack.c.bf16 %v902_v10, %v902_v10 }
 0x394   :  { %v2391_v19 = vpop.eup %2390 }
 0x395   :  { %v901_v14 = vmul.f32 %v2391_v19, %v2375_v45  ;;  %v1312_v45 = vsel %vm173_vm0, %v1300_v44, 0 }
 0x397   :  { %v909_v15 = vpack.c.bf16 %v901_v14, %v901_v14 }
 0x398   :  { %v2393_v17 = vpop.eup %2392 }
 0x399   :  { %2228 = vmatmul.mubr.msk.bf16.vlgmr.msra.gmra.mrb[20].mxu1 %vm160_vm1, %v909_v15  ;;  %v885_v21 = vpop.xlane.xlu1 %884  ;;  %2234 = vmatmul.mubr.msk.bf16.vlgmr.msra.gmra.mrb[40].mxu0 %vm160_vm1, %v910_v16  ;;  %v904_v22 = vmul.f32 %v2393_v17, %v2377_v49 }
 0x39a   :  { %2238 = vmatpush3.bf16.msra.mxu1 %v1066_v18  ;;  %2398 = vrcp.f32 %v885_v21  ;;  %2244 = vmatpush3.bf16.msra.mxu0 %v1112_v20  ;;  %v1307_v18 = vld [vmem:[%s3148_s7 + $0x1c] sm:$0xf] }
 0x39b   :  { %2239 = vmatprep.mubr.msk.bf16.mxu1 %vm2608_vm2, %v2607_v42  ;;  %2245 = vmatprep.mubr.msk.bf16.mxu0 %vm2608_vm2, %v2607_v42  ;;  %v912_v31 = vpack.c.bf16 %v904_v22, %v904_v22 }
 0x39c   :  { %v2395_v28 = vpop.eup %2394  ;;  %2249 = vmatprep.subr.bf16.mxu1 %v2607_v42  ;;  %2255 = vmatprep.subr.bf16.mxu0 %v2607_v42 }
 0x39d   :  { %v903_v25 = vmul.f32 %v2395_v28, %v2379_v52  ;;  %v2397_v33 = vpop.eup %2396  ;;  %v1404_v52 = vsel %vm173_vm0, %v1302_v48, 0 }
 0x39e   :  { %v906_v27 = vmul.f32 %v2397_v33, %v2920_v53 }
 0x39f   :  { %v911_v26 = vpack.c.bf16 %v903_v25, %v903_v25  ;;  %v1634_v25 = vsel %vm173_vm0, %v1307_v18, 0 }
 0x3a0   :  { %v914_v32 = vpack.c.bf16 %v906_v27, %v906_v27 }
 0x3a1   :  { %2240 = vmatmul.mubr.msk.bf16.vlgmr.msra.gmra.mrb[24].mxu1 %vm160_vm1, %v911_v26  ;;  %v891_v37 = vpop.xlane.xlu1 %890  ;;  %2246 = vmatmul.mubr.msk.bf16.vlgmr.msra.gmra.mrb[44].mxu0 %vm160_vm1, %v912_v31 }
 0x3a2   :  { %2250 = vmatpush3.bf16.msra.mxu1 %v1158_v36  ;;  %2400 = vrcp.f32 %v891_v37  ;;  %2256 = vmatpush3.bf16.msra.mxu0 %v1204_v34 }
 0x3a3   :  { %2251 = vmatprep.mubr.msk.bf16.mxu1 %vm2608_vm2, %v2607_v42  ;;  %2257 = vmatprep.mubr.msk.bf16.mxu0 %vm2608_vm2, %v2607_v42 }
 0x3a4   :  { %v2399_v30 = vpop.eup %2398  ;;  %2261 = vmatprep.subr.bf16.mxu1 %v2607_v42  ;;  %2267 = vmatprep.subr.bf16.mxu0 %v2607_v42 }
 0x3a5   :  { %v905_v39 = vmul.f32 %v2399_v30, %v2925_v59 }
 0x3a7   :  { %v913_v40 = vpack.c.bf16 %v905_v39, %v905_v39 }
 0x3a9   :  { %2252 = vmatmul.mubr.msk.bf16.vlgmr.msra.gmra.mrb[28].mxu1 %vm160_vm1, %v913_v40  ;;  %2258 = vmatmul.mubr.msk.bf16.vlgmr.msra.gmra.mrb[48].mxu0 %vm160_vm1, %v914_v32 }
 0x3aa   :  { %2262 = vmatpush3.bf16.msra.mxu1 %v1250_v35  ;;  %2263 = vmatprep.mubr.msk.bf16.mxu1 %vm2608_vm2, %v2607_v42 }
 0x3ab   :  { %2269 = vmatprep.mubr.msk.bf16.mxu0 %vm2608_vm2, %v2607_v42  ;;  %2273 = vmatprep.subr.bf16.mxu1 %v2607_v42 }
 0x3ac   :  { %v2401_v29 = vpop.eup %2400  ;;  %2268 = vmatpush3.bf16.msra.mxu0 %v1312_v45 }
 0x3ad   :  { %v907_v41 = vmul.f32 %v2401_v29, %v2929_v61  ;;  %2279 = vmatprep.subr.bf16.mxu0 %v2607_v42 }
 0x3af   :  { %v915_v43 = vpack.c.bf16 %v907_v41, %v907_v41 }
 0x3b1   :  { %2264 = vmatmul.mubr.msk.bf16.vlgmr.msra.gmra.mrb[32].mxu1 %vm160_vm1, %v915_v43 }
 0x3b2   :  { %2275 = vmatprep.mubr.msk.bf16.mxu1 %vm2608_vm2, %v2607_v42  ;;  %2274 = vmatpush3.bf16.msra.mxu1 %v1358_v47 }
 0x3b3   :  { %2285 = vmatprep.subr.bf16.mxu1 %v2607_v42 }
 0x464   :  { %v964_v49 = vpop.f32.mrb[36].mxu0 }
 0x465   :  { %v1292_v50 = vpack.c.bf16 %v964_v49, %v964_v49  ;;  %v2223_v51 = vpop.f32.mrb[37].mxu0 }
 0x466   :  { %v967_v53 = vpop.f32.mrb[38].mxu0 }
 0x467   :  { %v2224_v54 = vpop.f32.mrb[39].mxu0  ;;  %2270 = vmatmul.mubr.msk.bf16.vlgmr.msra.gmra.mrb[52].mxu0 %vm160_vm1, %v1292_v50 }
 0x468   :  { %2280 = vmatpush3.bf16.msra.mxu0 %v1404_v52  ;;  %2281 = vmatprep.mubr.msk.bf16.mxu0 %vm2608_vm2, %v2607_v42 }
 0x469   :  { %2291 = vmatprep.subr.bf16.mxu0 %v2607_v42 }
 0x46c   :  { %v1010_v57 = vpop.f32.mrb[20].mxu1  ;;  %v1056_v58 = vpop.f32.mrb[40].mxu0 }
 0x46d   :  { %v1293_v59 = vpack.c.bf16 %v1010_v57, %v1010_v57  ;;  %v1294_v60 = vpack.c.bf16 %v1056_v58, %v1056_v58  ;;  %v2229_v61 = vpop.f32.mrb[21].mxu1  ;;  %v2235_v62 = vpop.f32.mrb[41].mxu0 }
 0x46e   :  { %v1013_v1 = vpop.f32.mrb[22].mxu1  ;;  %v1059_v2 = vpop.f32.mrb[42].mxu0 }
 0x46f   :  { %v2230_v3 = vpop.f32.mrb[23].mxu1  ;;  %v2236_v4 = vpop.f32.mrb[43].mxu0  ;;  %2276 = vmatmul.mubr.msk.bf16.vlgmr.msra.gmra.mrb[36].mxu1 %vm160_vm1, %v1293_v59  ;;  %2282 = vmatmul.mubr.msk.bf16.vlgmr.msra.gmra.mrb[56].mxu0 %vm160_vm1, %v1294_v60 }
 0x470   :  { %2286 = vmatpush3.bf16.msra.mxu1 %v1450_v63  ;;  %2292 = vmatpush3.bf16.msra.mxu0 %v1496_v0 }
 0x471   :  { %2287 = vmatprep.mubr.msk.bf16.mxu1 %vm2608_vm2, %v2607_v42  ;;  %2293 = vmatprep.mubr.msk.bf16.mxu0 %vm2608_vm2, %v2607_v42 }
 0x472   :  { %2297 = vmatprep.subr.bf16.mxu1 %v2607_v42  ;;  %2303 = vmatprep.subr.bf16.mxu0 %v2607_v42 }
 0x474   :  { %v1102_v7 = vpop.f32.mrb[24].mxu1  ;;  %v1148_v8 = vpop.f32.mrb[44].mxu0 }
 0x475   :  { %v1295_v9 = vpack.c.bf16 %v1102_v7, %v1102_v7  ;;  %v1296_v10 = vpack.c.bf16 %v1148_v8, %v1148_v8  ;;  %v2241_v11 = vpop.f32.mrb[25].mxu1  ;;  %v2247_v19 = vpop.f32.mrb[45].mxu0 }
 0x476   :  { %v1105_v14 = vpop.f32.mrb[26].mxu1  ;;  %v1151_v15 = vpop.f32.mrb[46].mxu0 }
 0x477   :  { %v2242_v16 = vpop.f32.mrb[27].mxu1  ;;  %v2248_v17 = vpop.f32.mrb[47].mxu0  ;;  %2288 = vmatmul.mubr.msk.bf16.vlgmr.msra.gmra.mrb[40].mxu1 %vm160_vm1, %v1295_v9  ;;  %2294 = vmatmul.mubr.msk.bf16.vlgmr.msra.gmra.mrb[60].mxu0 %vm160_vm1, %v1296_v10 }
 0x478   :  { %2298 = vmatpush3.bf16.msra.mxu1 %v1542_v12  ;;  %2304 = vmatpush3.bf16.msra.mxu0 %v1588_v13  ;;  %v1700_v13 = vld [vmem:[#allocation7] sm:$0xff] }
 0x479   :  { %2299 = vmatprep.mubr.msk.bf16.mxu1 %vm2608_vm2, %v2607_v42  ;;  %2305 = vmatprep.mubr.msk.bf16.mxu0 %vm2608_vm2, %v2607_v42 }
 0x47a   :  { %2309 = vmatprep.subr.bf16.mxu1 %v2607_v42  ;;  %2315 = vmatprep.subr.bf16.mxu0 %v2607_v42 }
 0x47c   :  { %v1194_v20 = vpop.f32.mrb[28].mxu1  ;;  %v1240_v21 = vpop.f32.mrb[48].mxu0 }
 0x47d   :  { %v1297_v22 = vpack.c.bf16 %v1194_v20, %v1194_v20  ;;  %v1298_v28 = vpack.c.bf16 %v1240_v21, %v1240_v21  ;;  %v2253_v23 = vpop.f32.mrb[29].mxu1  ;;  %v2259_v24 = vpop.f32.mrb[49].mxu0 }
 0x47e   :  { %v1197_v26 = vpop.f32.mrb[30].mxu1  ;;  %v1243_v31 = vpop.f32.mrb[50].mxu0  ;;  %v1701_v24 = vld [vmem:[#allocation7 + $0x8] sm:$0xff] }
 0x47f   :  { %v2254_v33 = vpop.f32.mrb[31].mxu1  ;;  %v2260_v34 = vpop.f32.mrb[51].mxu0  ;;  %2300 = vmatmul.mubr.msk.bf16.vlgmr.msra.gmra.mrb[44].mxu1 %vm160_vm1, %v1297_v22  ;;  %2306 = vmatmul.mubr.msk.bf16.vlgmr.msra.gmra.mrb[64].mxu0 %vm160_vm1, %v1298_v28 }
 0x480   :  { %2310 = vmatpush3.bf16.msra.mxu1 %v1634_v25  ;;  %2311 = vmatprep.mubr.msk.bf16.mxu1 %vm2608_vm2, %v2607_v42 }
 0x481   :  { %2319 = vmatprep.mubr.msk.bf16.mxu0 %vm2608_vm2, %v2607_v42  ;;  %2323 = vmatprep.subr.bf16.mxu1 %v2607_v42 }
 0x484   :  { %v1286_v36 = vpop.f32.mrb[32].mxu1 }
 0x485   :  { %v1299_v37 = vpack.c.bf16 %v1286_v36, %v1286_v36  ;;  %v2265_v27 = vpop.f32.mrb[33].mxu1 }
 0x486   :  { %v1289_v30 = vpop.f32.mrb[34].mxu1  ;;  %v2361_v27 = vld [vmem:[#allocation13 + $0x8] sm:$0xff]  }
 0x487   :  { %v2266_v38 = vpop.f32.mrb[35].mxu1  ;;  %2312 = vmatmul.mubr.msk.bf16.vlgmr.msra.gmra.mrb[48].mxu1 %vm160_vm1, %v1299_v37  ;;  %v2360_v37 = vld [vmem:[#allocation13] sm:$0xff]  }
 0x488   :  { %2339 = vmatprep.mubr.msk.bf16.mxu1 %vm2608_vm2, %v2607_v42  ;;  %2316 = vmatpush3.bf16.msra.mxu0 %v2360_v37  ;;  %v2362_v30 = vld [vmem:[%s3154_s13] sm:$0xff]   ;;  %v2363_v38 = vld [vmem:[%s3154_s13 + $0x8] sm:$0xff]  }
 0x489   :  { %2317 = vmatprep.subr.bf16.mxu0 %v2607_v42  ;;  %2324 = vmatpush3.bf16.msra.mxu1 %v2362_v30 }
 0x48a   :  { %2325 = vmatprep.subr.bf16.mxu1 %v2607_v42 }
 0x48c   :  { %2318 = vmatpush3.bf16.msra.mxu0 %v2361_v27 }
 0x48d   :  { %2326 = vmatpush3.bf16.msra.mxu1 %v2363_v38 }
 0x48e   :  { %2327 = vmatprep.subr.bf16.mxu1 %v2607_v42 }
 0x53a   :  { %v1348_v39 = vpop.f32.mrb[52].mxu0 }
 0x53b   :  { %v2271_v40 = vpop.f32.mrb[53].mxu0  ;;  %v1677_v43 = vsel %vm1676_vm3, %v1348_v39, 0.0  ;;  %v2364_v39 = vld [vmem:[%s3154_s13 + $0x10] sm:$0xff]  }
 0x53c   :  { %v1351_v32 = vpop.f32.mrb[54].mxu0  ;;  %2328 = vmatpush3.bf16.msra.mxu1 %v2364_v39  ;;  %v2365_v40 = vld [vmem:[%s3154_s13 + $0x18] sm:$0xff]  }
 0x53d   :  { %v2272_v35 = vpop.f32.mrb[55].mxu0  ;;  %2329 = vmatprep.subr.bf16.mxu1 %v2607_v42  ;;  %v2366_v32 = vld [vmem:[%s3154_s13 + $0x20] sm:$0xff]  }
 0x53e   :  { %v2367_v35 = vld [vmem:[%s3154_s13 + $0x28] sm:$0xff]  }
 0x540   :  { %2330 = vmatpush3.bf16.msra.mxu1 %v2365_v40 }
 0x541   :  { %2331 = vmatprep.subr.bf16.mxu1 %v2607_v42 }
 0x542   :  { %v1394_v29 = vpop.f32.mrb[36].mxu1  ;;  %v1440_v41 = vpop.f32.mrb[56].mxu0 }
 0x543   :  { %v1678_v44 = vsel %vm1676_vm3, %v1440_v41, 0.0  ;;  %v2277_v45 = vpop.f32.mrb[37].mxu1  ;;  %v2283_v46 = vpop.f32.mrb[57].mxu0  ;;  %v1684_v54 = vsel %vm1676_vm3, %v1394_v29, 0.0 }
 0x544   :  { %v1679_v47 = vadd.f32 %v1678_v44, %v1677_v43  ;;  %v1397_v48 = vpop.f32.mrb[38].mxu1  ;;  %v1443_v49 = vpop.f32.mrb[58].mxu0  ;;  %2332 = vmatpush3.bf16.msra.mxu1 %v2366_v32 }
 0x545   :  { %v2278_v50 = vpop.f32.mrb[39].mxu1  ;;  %v2284_v51 = vpop.f32.mrb[59].mxu0  ;;  %2333 = vmatprep.subr.bf16.mxu1 %v2607_v42 }
 0x548   :  { %2334 = vmatpush3.bf16.msra.mxu1 %v2367_v35 }
 0x549   :  { %2335 = vmatprep.subr.bf16.mxu1 %v2607_v42 }
 0x54a   :  { %v1486_v52 = vpop.f32.mrb[40].mxu1  ;;  %v1532_v53 = vpop.f32.mrb[60].mxu0 }
 0x54b   :  { %v1685_v55 = vsel %vm1676_vm3, %v1486_v52, 0.0  ;;  %v1680_v56 = vsel %vm1676_vm3, %v1532_v53, 0.0  ;;  %v2289_v57 = vpop.f32.mrb[41].mxu1  ;;  %v2295_v58 = vpop.f32.mrb[61].mxu0 }
 0x54c   :  { %v1686_v59 = vadd.f32 %v1685_v55, %v1684_v54  ;;  %v1681_v60 = vadd.f32 %v1680_v56, %v1679_v47  ;;  %v1489_v61 = vpop.f32.mrb[42].mxu1  ;;  %v1535_v62 = vpop.f32.mrb[62].mxu0 }
 0x54d   :  { %v2290_v63 = vpop.f32.mrb[43].mxu1  ;;  %v2296_v0 = vpop.f32.mrb[63].mxu0 }
 0x552   :  { %v1578_v1 = vpop.f32.mrb[44].mxu1  ;;  %v1624_v2 = vpop.f32.mrb[64].mxu0 }
 0x553   :  { %v1687_v3 = vsel %vm1676_vm3, %v1578_v1, 0.0  ;;  %v1682_v4 = vsel %vm1676_vm3, %v1624_v2, 0.0  ;;  %v2301_v6 = vpop.f32.mrb[45].mxu1  ;;  %v2307_v7 = vpop.f32.mrb[65].mxu0  ;;  %v2050_v1 = vld [vmem:[%s3151_s10] ss:$0 sm:$0xff] }
 0x554   :  { %v1688_v8 = vadd.f32 %v1687_v3, %v1686_v59  ;;  %v1683_v9 = vadd.f32 %v1682_v4, %v1681_v60  ;;  %v1581_v10 = vpop.f32.mrb[46].mxu1  ;;  %v1627_v11 = vpop.f32.mrb[66].mxu0  ;;  %v2049_v60 = vld [vmem:[%s3150_s9] ss:$0 sm:$0xff]  ;;  %v2368_v6 = vld [vmem:[%s3154_s13 + $0x30] sm:$0xff]   ;;  %v2369_v7 = vld [vmem:[%s3154_s13 + $0x38] sm:$0xff]  }
 0x555   :  { %v2302_v19 = vpop.f32.mrb[47].mxu1  ;;  %v2308_v12 = vpop.f32.mrb[67].mxu0  ;;  %2336 = vmatpush3.bf16.msra.mxu1 %v2368_v6 }
 0x556   :  { %v1698_v14 = vadd.f32 %v2048_v5, %v1683_v9  ;;  %2337 = vmatprep.subr.bf16.mxu1 %v2607_v42  ;;  %v2055_v42 = vld [vmem:[%s3155_s14] ss:$0 sm:$0xff] }
 0x558   :  { %v3058_v15 = vadd.f32 %v1700_v13, %v1698_v14 }
 0x559   :  { %2338 = vmatpush3.bf16.msra.mxu1 %v2369_v7 }
 0x55a   :  { %v1670_v16 = vpop.f32.mrb[48].mxu1  ;;  %v1706_v17 = vsel %vm1676_vm3, %v3058_v15, 0.0  ;;  %v1715_v18 = vmul.f32 %v3058_v15, %v3058_v15 }
 0x55b   :  { %v1689_v20 = vsel %vm1676_vm3, %v1670_v16, 0.0  ;;  %v2313_v21 = vpop.f32.mrb[49].mxu1  ;;  %1707 = vadd.xlane.f32.xlu0 %v1706_v17 }
 0x55c   :  { %v1690_v22 = vadd.f32 %v1689_v20, %v1688_v8  ;;  %v1673_v28 = vpop.f32.mrb[50].mxu1  ;;  %v1717_v26 = vsel %vm1676_vm3, %v1715_v18, 0.0  ;;  %v2051_v8 = vld [vmem:[%s3153_s12] ss:$0 sm:$0xff] }
 0x55d   :  { %v2314_v23 = vpop.f32.mrb[51].mxu1 }
 0x55e   :  { %v1699_v25 = vadd.f32 %v2048_v5, %v1690_v22 }
 0x55f   :  { %1718 = vadd.xlane.f32.xlu0 %v1717_v26 }
 0x560   :  { %v1703_v31 = vadd.f32 %v1701_v24, %v1699_v25 }
 0x562   :  { %v1709_v33 = vsel %vm1676_vm3, %v1703_v31, 0.0  ;;  %v1716_v34 = vmul.f32 %v1703_v31, %v1703_v31 }
 0x563   :  { %1710 = vadd.xlane.f32.xlu1 %v1709_v33 }
 0x564   :  { %v1720_v36 = vsel %vm1676_vm3, %v1716_v34, 0.0 }
 0x567   :  { %1721 = vadd.xlane.f32.xlu1 %v1720_v36 }
 0x5e8   :  { %v1708_v29 = vpop.xlane.xlu0 %1707 }
 0x5e9   :  { %v1713_v41 = vmul.f32 0.03125, %v1708_v29 }
 0x5eb   :  { %v1725_v44 = vmul.f32 %v1713_v41, %v1713_v41  ;;  %v1731_v58 = vsub.f32 %v3058_v15, %v1713_v41 }
 0x5ec   :  { %v1719_v43 = vpop.xlane.xlu0 %1718 }
 0x5ed   :  { %v1723_v45 = vmul.f32 0.03125, %v1719_v43 }
 0x5ef   :  { %v1727_v46 = vsub.f32 %v1723_v45, %v1725_v44 }
 0x5f0   :  { %v1711_v47 = vpop.xlane.xlu1 %1710 }
 0x5f1   :  { %v1729_v48 = vmax.f32 %v1727_v46, 0.0  ;;  %v1714_v49 = vmul.f32 0.03125, %v1711_v47 }
 0x5f3   :  { %v1733_v50 = vadd.f32 1e-05, %v1729_v48  ;;  %v1726_v52 = vmul.f32 %v1714_v49, %v1714_v49  ;;  %v1732_v61 = vsub.f32 %v1703_v31, %v1714_v49 }
 0x5f4   :  { %v1722_v51 = vpop.xlane.xlu1 %1721 }
 0x5f5   :  { %v1724_v53 = vmul.f32 0.03125, %v1722_v51  ;;  %2402 = vrsqrt.f32 %v1733_v50  ;;  %v2064_v51 = vld [vmem:[%s3156_s15] ss:$0 sm:$0xff]  ;;  %s2564_s15 = scalar_lea.vmem %s1998_s25, 256 }
 0x5f6   :  { %p2565_p0 = scmp.ne.s32.totalorder %s1998_s25, %s2564_s15  ;;  %p2570_p2 = scmp.lt.s32.totalorder %s2564_s15, %s2564_s15 }
 0x5f7   :  { %v1728_v54 = vsub.f32 %v1724_v53, %v1726_v52 }
 0x5f8   :  { %p2571_p3 = por %p2570_p2, %p2569_p1 }
 0x5f9   :  { %v1730_v55 = vmax.f32 %v1728_v54, 0.0 }
 0x5fa   :  { %p2572_p4 = pnand %p2571_p3, %p2565_p0 }
 0x5fb   :  { %v1734_v56 = vadd.f32 1e-05, %v1730_v55  ;;  %v2065_v55 = vld [vmem:[%s3157_s16] ss:$0 sm:$0xff] }
 0x5fd   :  { %2404 = vrsqrt.f32 %v1734_v56 }
 0x5ff   :  { %v2403_v57 = vpop.eup %2402 }
 0x600   :  { %v1737_v59 = vmul.f32 %v2403_v57, %v1731_v58 }
 0x602   :  { %v1745_v0 = vmul.f32 %v2049_v60, %v1737_v59 }
 0x604   :  { %v1753_v3 = vadd.f32 %v2050_v1, %v1745_v0 }
 0x607   :  { %v2405_v62 = vpop.eup %2404 }
 0x608   :  { %v1738_v63 = vmul.f32 %v2405_v62, %v1732_v61 }
 0x60a   :  { %v1746_v2 = vmul.f32 %v2049_v60, %v1738_v63 }
 0x60c   :  { %v1754_v4 = vadd.f32 %v2050_v1, %v1746_v2 }
 0x60e   :  { %v1755_v5 = vpack.c.bf16 %v1754_v4, %v1753_v3 }
 0x610   :  { %2320 = vmatmul.mubr.msk.bf16.vlgmr.msra.gmra.mrb[68].mxu0 %vm1676_vm3, %v1755_v5 }
 0x6e3   :  { %v1816_v9 = vpop.f32.mrb[68].mxu0 }
 0x6e4   :  { %v1817_v10 = vadd.f32 %v2051_v8, %v1816_v9  ;;  %v2321_v11 = vpop.f32.mrb[69].mxu0 }
 0x6e5   :  { %v1819_v19 = vpop.f32.mrb[70].mxu0 }
 0x6e6   :  { %v1820_v12 = vadd.f32 %v2051_v8, %v1819_v19  ;;  %v2322_v13 = vpop.f32.mrb[71].mxu0  ;;  %v1823_v14 = vmax.f32 %v1817_v10, 0.0 }
 0x6e8   :  { %v1824_v15 = vmax.f32 %v1820_v12, 0.0 }
 0x6ea   :  { %v1825_v16 = vpack.c.bf16 %v1824_v15, %v1823_v14 }
 0x6ec   :  { %2340 = vmatmul.mubr.bf16.vlgmr.msra.gmra.mrb[52].mxu1 %v1825_v16 }
 0x7bf   :  { %v1931_v17 = vpop.f32.mrb[52].mxu1 }
 0x7c0   :  { %v1932_v18 = vadd.f32 %v2055_v42, %v1931_v17  ;;  %v2341_v20 = vpop.f32.mrb[53].mxu1 }
 0x7c1   :  { %v1934_v21 = vpop.f32.mrb[54].mxu1 }
 0x7c2   :  { %v1938_v22 = vadd.f32 %v1932_v18, %v1753_v3  ;;  %v1935_v28 = vadd.f32 %v2055_v42, %v1934_v21  ;;  %v2342_v23 = vpop.f32.mrb[55].mxu1 }
 0x7c4   :  { %v1939_v24 = vadd.f32 %v1935_v28, %v1754_v4  ;;  %v1942_v25 = vsel %vm1676_vm3, %v1938_v22, 0.0  ;;  %v1950_v26 = vmul.f32 %v1938_v22, %v1938_v22 }
 0x7c5   :  { %1943 = vadd.xlane.f32.xlu0 %v1942_v25 }
 0x7c6   :  { %v1945_v31 = vsel %vm1676_vm3, %v1939_v24, 0.0  ;;  %v1951_v33 = vmul.f32 %v1939_v24, %v1939_v24  ;;  %v1952_v34 = vsel %vm1676_vm3, %v1950_v26, 0.0 }
 0x7c7   :  { %1946 = vadd.xlane.f32.xlu1 %v1945_v31 }
 0x7c8   :  { %v1955_v36 = vsel %vm1676_vm3, %v1951_v33, 0.0 }
 0x7c9   :  { %1953 = vadd.xlane.f32.xlu0 %v1952_v34 }
 0x7cb   :  { %1956 = vadd.xlane.f32.xlu1 %v1955_v36 }
 0x852   :  { %v1944_v37 = vpop.xlane.xlu0 %1943 }
 0x853   :  { %v1948_v27 = vmul.f32 0.03125, %v1944_v37 }
 0x854   :  { %v1947_v30 = vpop.xlane.xlu1 %1946 }
 0x855   :  { %v1949_v38 = vmul.f32 0.03125, %v1947_v30  ;;  %v1960_v40 = vmul.f32 %v1948_v27, %v1948_v27  ;;  %v1966_v49 = vsub.f32 %v1938_v22, %v1948_v27 }
 0x856   :  { %v1954_v39 = vpop.xlane.xlu0 %1953 }
 0x857   :  { %v1958_v32 = vmul.f32 0.03125, %v1954_v39  ;;  %v1961_v29 = vmul.f32 %v1949_v38, %v1949_v38  ;;  %v1967_v52 = vsub.f32 %v1939_v24, %v1949_v38 }
 0x858   :  { %v1957_v35 = vpop.xlane.xlu1 %1956 }
 0x859   :  { %v1962_v41 = vsub.f32 %v1958_v32, %v1960_v40  ;;  %v1959_v43 = vmul.f32 0.03125, %v1957_v35 }
 0x85b   :  { %v1964_v44 = vmax.f32 %v1962_v41, 0.0  ;;  %v1963_v45 = vsub.f32 %v1959_v43, %v1961_v29 }
 0x85d   :  { %v1968_v46 = vadd.f32 1e-05, %v1964_v44  ;;  %v1965_v47 = vmax.f32 %v1963_v45, 0.0 }
 0x85f   :  { %2406 = vrsqrt.f32 %v1968_v46  ;;  %v1969_v48 = vadd.f32 1e-05, %v1965_v47 }
 0x861   :  { %2408 = vrsqrt.f32 %v1969_v48 }
 0x869   :  { %v2407_v50 = vpop.eup %2406 }
 0x86a   :  { %v1972_v53 = vmul.f32 %v2407_v50, %v1966_v49 }
 0x86b   :  { %v2409_v54 = vpop.eup %2408 }
 0x86c   :  { %v1973_v56 = vmul.f32 %v2409_v54, %v1967_v52  ;;  %v1980_v57 = vmul.f32 %v2064_v51, %v1972_v53 }
 0x86e   :  { %v1981_v58 = vmul.f32 %v2064_v51, %v1973_v56  ;;  %v1988_v59 = vadd.f32 %v2065_v55, %v1980_v57 }
 0x870   :  { %v1989_v60 = vadd.f32 %v2065_v55, %v1981_v58  ;;  %1990 = vst.msk [vmem:[#allocation14] sm:$0xff] %vm1676_vm3, %v1988_v59 }
 0x872   :  { %1991 = vst.msk [vmem:[#allocation14 + $0x8] sm:$0xff] %vm1676_vm3, %v1989_v60 }
 0x873   :  { %2575 = shalt.err (!%p2572_p4)
}
 0x874   :  { %s2576_s28 = scalar_lea.hbm %s3158_s17, 256 }
 0x875   :  { %p2577_p5 = scmp.ne.s32.totalorder %s3158_s17, %s2576_s28  ;;  %p2580_p6 = scmp.lt.u32.totalorder %s2576_s28, %s3158_s17 }
 0x877   :  { %p2582_p7 = pnand %p2580_p6, %p2577_p5 }
 0x879   :  { %2585 = shalt.err (!%p2582_p7)
}
 0x87a   :  { %2003 = dma.vmem_to_hbm [thread:$0]  %s1998_s25, 256, %s3158_s17, [#allocation4], %s2598_s21, %s2598_s21, %s2599_s22  }
 0x87b   :  { %2594 = dma.done.wait [#allocation4], 256  }
 0x87c   :  { %2595 = vsyncadd [#allocation4], 4294967040 }
 0x87d   :  { %2007 = vsyncpa [#allocation3], 1 }
 0x87e   :  { %2008 = vsyncpa [#allocation6], 1 }
 0x87f   :  { %2009 = vsyncpa [#allocation9], 1 }
 0x880   :  { %2010 = vsyncpa [#allocation12], 1 }
 0x881   :  { %2011 = vsyncpa [#allocation4], 1 }

</bundles_post_ra>
